<compile_context>
chip_gen: v5e
topology: v5e:2x2
jax: 0.10.0
libtpu: 0.0.40
codegen_flags: <defaults>
</compile_context>

<pallas_src>
import functools

import jax
import jax.numpy as jnp
from jax.experimental import pallas as pl
from jax.experimental.pallas import tpu as pltpu

NEG_SLOPE = 0.01  # F.leaky_relu default negative_slope


def _leaky(x):
    return jnp.where(x > 0, x, NEG_SLOPE * x)


def _conv2d_kernel(x_ref, w_ref, b_ref, o_ref, *, k_h, k_w, s_h, s_w,
                   h_out, w_out, apply_act):
    """One grid step == `Nb` batch samples.

    x_ref : (Nb, Hp, Wp, C)        spatially pre-padded NHWC input (bf16)
    w_ref : (Kh*Kw, C, F)          one (C, F) matmul weight per conv tap (bf16)
    b_ref : (1, F)                 bias (f32)
    o_ref : (Nb, H_out, W_out, F)  NHWC output (f32)
    """
    nb, _, _, c = x_ref.shape
    f = w_ref.shape[-1]
    p = nb * h_out * w_out

    xv = x_ref[...]                       # single load of the padded slab
    acc = jnp.zeros((p, f), jnp.float32)  # f32 accumulator

    # Conv2d as Kh*Kw accumulated shifted matmuls (no im2col materialization).
    for tap in range(k_h * k_w):
        dh, dw = tap // k_w, tap % k_w
        xs = jax.lax.slice(
            xv,
            start_indices=(0, dh, dw, 0),
            limit_indices=(nb,
                           dh + s_h * (h_out - 1) + 1,
                           dw + s_w * (w_out - 1) + 1,
                           c),
            strides=(1, s_h, s_w, 1))     # (Nb, H_out, W_out, C)
        acc = acc + jnp.dot(xs.reshape(p, c), w_ref[tap],
                            preferred_element_type=jnp.float32)

    acc = acc + b_ref[...]                # f32 bias
    if apply_act:
        acc = _leaky(acc)                 # f32 elementwise (v5e-friendly)
    o_ref[...] = acc.reshape(nb, h_out, w_out, f).astype(o_ref.dtype)


def conv2d_layer(x, weight, bias, *, strides=(1, 1), padding="same",
                 activation=True, samples_per_step=1,
                 matmul_dtype=jnp.bfloat16):
    """x: (N, C, H, W) f32 (PyTorch NCHW). weight: (F, C, Kh, Kw). bias: (F,).

    Returns (N, F, H_out, W_out) matching nn.Conv2d(padding='same'-style) +
    optional leaky_relu.
    """
    n, c, h, w = x.shape
    f, c_w, k_h, k_w = weight.shape
    assert c == c_w, (c, c_w)
    s_h, s_w = strides
    if padding == "same":
        p_h, p_w = (k_h - 1) // 2, (k_w - 1) // 2
    else:
        p_h, p_w = padding  # explicit (pad_h, pad_w)
    h_out = (h + 2 * p_h - k_h) // s_h + 1
    w_out = (w + 2 * p_w - k_w) // s_w + 1

    nb = max(1, min(samples_per_step, n))
    n_steps = pl.cdiv(n, nb)
    n_pad = n_steps * nb
    h_p, w_p = h + 2 * p_h, w + 2 * p_w

    # NCHW -> spatially padded NHWC (channels on the lane axis); bf16 matmul
    # operands, f32 everything else.
    x_nhwc = jnp.transpose(x, (0, 2, 3, 1))
    x_nhwc = jnp.pad(x_nhwc, ((0, n_pad - n), (p_h, p_h), (p_w, p_w), (0, 0)))
    x_nhwc = x_nhwc.astype(matmul_dtype)

    # (F, C, Kh, Kw) -> (Kh*Kw, C, F): one small matmul weight per conv tap,
    # shipped as a single input stream.
    w_taps = jnp.transpose(weight, (2, 3, 1, 0)).reshape(k_h * k_w, c, f)
    w_taps = w_taps.astype(matmul_dtype)
    b_row = bias.reshape(1, f).astype(jnp.float32)

    kernel = functools.partial(
        _conv2d_kernel, k_h=k_h, k_w=k_w, s_h=s_h, s_w=s_w,
        h_out=h_out, w_out=w_out, apply_act=bool(activation))

    out_nhwc = pl.pallas_call(
        kernel,
        out_shape=jax.ShapeDtypeStruct((n_pad, h_out, w_out, f), jnp.float32),
        grid_spec=pltpu.PrefetchScalarGridSpec(
            num_scalar_prefetch=0,
            grid=(n_steps,),
            in_specs=[
                pl.BlockSpec((nb, h_p, w_p, c), lambda b: (b, 0, 0, 0)),
                pl.BlockSpec((k_h * k_w, c, f), lambda b: (0, 0, 0)),
                pl.BlockSpec((1, f), lambda b: (0, 0)),
            ],
            out_specs=pl.BlockSpec((nb, h_out, w_out, f),
                                   lambda b: (b, 0, 0, 0)),
        ),
        compiler_params=pltpu.CompilerParams(
            dimension_semantics=("parallel",)),
    )(x_nhwc, w_taps, b_row)

    out_nhwc = out_nhwc[:n]
    # TODO(synk): consumers that accept NHWC should take out_nhwc directly and
    # skip this extra XLA transpose pass back to PyTorch's NCHW layout.
    return jnp.transpose(out_nhwc, (0, 3, 1, 2))


# ---------------- pure-JAX reference (same bf16-matmul / f32-accum scheme) ----
def _reference(x, weight, bias, *, strides, padding, activation,
               matmul_dtype=jnp.bfloat16):
    k_h, k_w = weight.shape[2], weight.shape[3]
    if padding == "same":
        p_h, p_w = (k_h - 1) // 2, (k_w - 1) // 2
    else:
        p_h, p_w = padding
    out = jax.lax.conv_general_dilated(
        x.astype(matmul_dtype), weight.astype(matmul_dtype),
        window_strides=strides, padding=[(p_h, p_h), (p_w, p_w)],
        dimension_numbers=("NCHW", "OIHW", "NCHW"),
        preferred_element_type=jnp.float32)
    out = out + bias[None, :, None, None].astype(jnp.float32)
    if activation:
        out = _leaky(out)
    return out


if __name__ == "__main__":
    # Small shapes consistent with the module: batch=2, channels=4, spatial=16.
    N, C_IN, H, W = 2, 4, 16, 16
    FILTERS, K_H, K_W = 8, 3, 3
    STRIDES = (1, 1)

    key = jax.random.PRNGKey(0)
    k_x, k_w, k_b = jax.random.split(key, 3)

    x = jax.random.normal(k_x, (N, C_IN, H, W), dtype=jnp.float32)
    # Conv2d-style init (uniform +/- 1/sqrt(fan_in)).
    scale = 1.0 / jnp.sqrt(C_IN * K_H * K_W)
    w = jax.random.uniform(k_w, (FILTERS, C_IN, K_H, K_W), jnp.float32,
                           -scale, scale)
    b = jax.random.uniform(k_b, (FILTERS,), jnp.float32, -scale, scale)

    run = functools.partial(conv2d_layer, strides=STRIDES, padding="same",
                            activation=True, samples_per_step=1)
    out = jax.block_until_ready(jax.jit(run)(x, w, b))

    ref = _reference(x, w, b, strides=STRIDES, padding="same", activation=True)
    assert out.shape == ref.shape == (N, FILTERS, H, W), (out.shape, ref.shape)
    assert jnp.allclose(out, ref, atol=2e-3, rtol=2e-3), float(
        jnp.max(jnp.abs(out - ref)))

    print("KERNEL_OK")
</pallas_src>

<mosaic_0001>
module attributes {stable_mosaic.version = 11 : i64} {
  func.func @_conv2d_kernel(%arg0: i32, %arg1: memref<1x18x18x4xbf16, #tpu.memory_space<vmem>>, %arg2: memref<9x4x8xbf16, #tpu.memory_space<vmem>>, %arg3: memref<1x8xf32, #tpu.memory_space<vmem>>, %arg4: memref<1x16x16x8xf32, #tpu.memory_space<vmem>>) attributes {dimension_semantics = [#tpu.dimension_semantics<parallel>], iteration_bounds = array<i64: 2>, scalar_prefetch = 0 : i64, scratch_operands = 0 : i64, tpu.core_type = #tpu.core_type<tc>, window_params = [{transform_indices = @transform_0, window_bounds = array<i64: 1, 18, 18, 4>}, {pipeline_mode = #tpu.pipeline_mode<synchronous>, transform_indices = @transform_1, window_bounds = array<i64: 9, 4, 8>}, {pipeline_mode = #tpu.pipeline_mode<synchronous>, transform_indices = @transform_2, window_bounds = array<i64: 1, 8>}, {transform_indices = @transform_3, window_bounds = array<i64: 1, 16, 16, 8>}]} {
    %c0 = arith.constant 0 : index
    %c0_0 = arith.constant 0 : index
    %c0_1 = arith.constant 0 : index
    %c0_2 = arith.constant 0 : index
    %0 = vector.load %arg1[%c0, %c0_0, %c0_1, %c0_2] : memref<1x18x18x4xbf16, #tpu.memory_space<vmem>>, vector<1x18x18x4xbf16>
    %cst = arith.constant 0.000000e+00 : f32
    %1 = vector.broadcast %cst : f32 to vector<256x8xf32>
    %2 = vector.extract_strided_slice %0 {offsets = [0, 0, 0, 0], sizes = [1, 16, 16, 4], strides = [1, 1, 1, 1]} : vector<1x18x18x4xbf16> to vector<1x16x16x4xbf16>
    %3 = vector.shape_cast %2 : vector<1x16x16x4xbf16> to vector<256x4xbf16>
    %c0_3 = arith.constant 0 : index
    %c0_4 = arith.constant 0 : index
    %c0_5 = arith.constant 0 : index
    %4 = vector.load %arg2[%c0_3, %c0_4, %c0_5] : memref<9x4x8xbf16, #tpu.memory_space<vmem>>, vector<1x4x8xbf16>
    %5 = vector.shape_cast %4 : vector<1x4x8xbf16> to vector<4x8xbf16>
    %cst_6 = arith.constant dense<0.000000e+00> : vector<256x8xf32>
    %6 = tpu.matmul %3, %5, %cst_6 {dimension_numbers = #tpu.dot_dimension_numbers<[1], [0], [0], [1], [0, 0, 1, 1], [], []>} : vector<256x4xbf16>, vector<4x8xbf16>, vector<256x8xf32> -> vector<256x8xf32>
    %7 = arith.addf %1, %6 : vector<256x8xf32>
    %8 = vector.extract_strided_slice %0 {offsets = [0, 0, 1, 0], sizes = [1, 16, 16, 4], strides = [1, 1, 1, 1]} : vector<1x18x18x4xbf16> to vector<1x16x16x4xbf16>
    %9 = vector.shape_cast %8 : vector<1x16x16x4xbf16> to vector<256x4xbf16>
    %c1 = arith.constant 1 : index
    %c0_7 = arith.constant 0 : index
    %c0_8 = arith.constant 0 : index
    %10 = vector.load %arg2[%c1, %c0_7, %c0_8] : memref<9x4x8xbf16, #tpu.memory_space<vmem>>, vector<1x4x8xbf16>
    %11 = vector.shape_cast %10 : vector<1x4x8xbf16> to vector<4x8xbf16>
    %cst_9 = arith.constant dense<0.000000e+00> : vector<256x8xf32>
    %12 = tpu.matmul %9, %11, %cst_9 {dimension_numbers = #tpu.dot_dimension_numbers<[1], [0], [0], [1], [0, 0, 1, 1], [], []>} : vector<256x4xbf16>, vector<4x8xbf16>, vector<256x8xf32> -> vector<256x8xf32>
    %13 = arith.addf %7, %12 : vector<256x8xf32>
    %14 = vector.extract_strided_slice %0 {offsets = [0, 0, 2, 0], sizes = [1, 16, 16, 4], strides = [1, 1, 1, 1]} : vector<1x18x18x4xbf16> to vector<1x16x16x4xbf16>
    %15 = vector.shape_cast %14 : vector<1x16x16x4xbf16> to vector<256x4xbf16>
    %c2 = arith.constant 2 : index
    %c0_10 = arith.constant 0 : index
    %c0_11 = arith.constant 0 : index
    %16 = vector.load %arg2[%c2, %c0_10, %c0_11] : memref<9x4x8xbf16, #tpu.memory_space<vmem>>, vector<1x4x8xbf16>
    %17 = vector.shape_cast %16 : vector<1x4x8xbf16> to vector<4x8xbf16>
    %cst_12 = arith.constant dense<0.000000e+00> : vector<256x8xf32>
    %18 = tpu.matmul %15, %17, %cst_12 {dimension_numbers = #tpu.dot_dimension_numbers<[1], [0], [0], [1], [0, 0, 1, 1], [], []>} : vector<256x4xbf16>, vector<4x8xbf16>, vector<256x8xf32> -> vector<256x8xf32>
    %19 = arith.addf %13, %18 : vector<256x8xf32>
    %20 = vector.extract_strided_slice %0 {offsets = [0, 1, 0, 0], sizes = [1, 16, 16, 4], strides = [1, 1, 1, 1]} : vector<1x18x18x4xbf16> to vector<1x16x16x4xbf16>
    %21 = vector.shape_cast %20 : vector<1x16x16x4xbf16> to vector<256x4xbf16>
    %c3 = arith.constant 3 : index
    %c0_13 = arith.constant 0 : index
    %c0_14 = arith.constant 0 : index
    %22 = vector.load %arg2[%c3, %c0_13, %c0_14] : memref<9x4x8xbf16, #tpu.memory_space<vmem>>, vector<1x4x8xbf16>
    %23 = vector.shape_cast %22 : vector<1x4x8xbf16> to vector<4x8xbf16>
    %cst_15 = arith.constant dense<0.000000e+00> : vector<256x8xf32>
    %24 = tpu.matmul %21, %23, %cst_15 {dimension_numbers = #tpu.dot_dimension_numbers<[1], [0], [0], [1], [0, 0, 1, 1], [], []>} : vector<256x4xbf16>, vector<4x8xbf16>, vector<256x8xf32> -> vector<256x8xf32>
    %25 = arith.addf %19, %24 : vector<256x8xf32>
    %26 = vector.extract_strided_slice %0 {offsets = [0, 1, 1, 0], sizes = [1, 16, 16, 4], strides = [1, 1, 1, 1]} : vector<1x18x18x4xbf16> to vector<1x16x16x4xbf16>
    %27 = vector.shape_cast %26 : vector<1x16x16x4xbf16> to vector<256x4xbf16>
    %c4 = arith.constant 4 : index
    %c0_16 = arith.constant 0 : index
    %c0_17 = arith.constant 0 : index
    %28 = vector.load %arg2[%c4, %c0_16, %c0_17] : memref<9x4x8xbf16, #tpu.memory_space<vmem>>, vector<1x4x8xbf16>
    %29 = vector.shape_cast %28 : vector<1x4x8xbf16> to vector<4x8xbf16>
    %cst_18 = arith.constant dense<0.000000e+00> : vector<256x8xf32>
    %30 = tpu.matmul %27, %29, %cst_18 {dimension_numbers = #tpu.dot_dimension_numbers<[1], [0], [0], [1], [0, 0, 1, 1], [], []>} : vector<256x4xbf16>, vector<4x8xbf16>, vector<256x8xf32> -> vector<256x8xf32>
    %31 = arith.addf %25, %30 : vector<256x8xf32>
    %32 = vector.extract_strided_slice %0 {offsets = [0, 1, 2, 0], sizes = [1, 16, 16, 4], strides = [1, 1, 1, 1]} : vector<1x18x18x4xbf16> to vector<1x16x16x4xbf16>
    %33 = vector.shape_cast %32 : vector<1x16x16x4xbf16> to vector<256x4xbf16>
    %c5 = arith.constant 5 : index
    %c0_19 = arith.constant 0 : index
    %c0_20 = arith.constant 0 : index
    %34 = vector.load %arg2[%c5, %c0_19, %c0_20] : memref<9x4x8xbf16, #tpu.memory_space<vmem>>, vector<1x4x8xbf16>
    %35 = vector.shape_cast %34 : vector<1x4x8xbf16> to vector<4x8xbf16>
    %cst_21 = arith.constant dense<0.000000e+00> : vector<256x8xf32>
    %36 = tpu.matmul %33, %35, %cst_21 {dimension_numbers = #tpu.dot_dimension_numbers<[1], [0], [0], [1], [0, 0, 1, 1], [], []>} : vector<256x4xbf16>, vector<4x8xbf16>, vector<256x8xf32> -> vector<256x8xf32>
    %37 = arith.addf %31, %36 : vector<256x8xf32>
    %38 = vector.extract_strided_slice %0 {offsets = [0, 2, 0, 0], sizes = [1, 16, 16, 4], strides = [1, 1, 1, 1]} : vector<1x18x18x4xbf16> to vector<1x16x16x4xbf16>
    %39 = vector.shape_cast %38 : vector<1x16x16x4xbf16> to vector<256x4xbf16>
    %c6 = arith.constant 6 : index
    %c0_22 = arith.constant 0 : index
    %c0_23 = arith.constant 0 : index
    %40 = vector.load %arg2[%c6, %c0_22, %c0_23] : memref<9x4x8xbf16, #tpu.memory_space<vmem>>, vector<1x4x8xbf16>
    %41 = vector.shape_cast %40 : vector<1x4x8xbf16> to vector<4x8xbf16>
    %cst_24 = arith.constant dense<0.000000e+00> : vector<256x8xf32>
    %42 = tpu.matmul %39, %41, %cst_24 {dimension_numbers = #tpu.dot_dimension_numbers<[1], [0], [0], [1], [0, 0, 1, 1], [], []>} : vector<256x4xbf16>, vector<4x8xbf16>, vector<256x8xf32> -> vector<256x8xf32>
    %43 = arith.addf %37, %42 : vector<256x8xf32>
    %44 = vector.extract_strided_slice %0 {offsets = [0, 2, 1, 0], sizes = [1, 16, 16, 4], strides = [1, 1, 1, 1]} : vector<1x18x18x4xbf16> to vector<1x16x16x4xbf16>
    %45 = vector.shape_cast %44 : vector<1x16x16x4xbf16> to vector<256x4xbf16>
    %c7 = arith.constant 7 : index
    %c0_25 = arith.constant 0 : index
    %c0_26 = arith.constant 0 : index
    %46 = vector.load %arg2[%c7, %c0_25, %c0_26] : memref<9x4x8xbf16, #tpu.memory_space<vmem>>, vector<1x4x8xbf16>
    %47 = vector.shape_cast %46 : vector<1x4x8xbf16> to vector<4x8xbf16>
    %cst_27 = arith.constant dense<0.000000e+00> : vector<256x8xf32>
    %48 = tpu.matmul %45, %47, %cst_27 {dimension_numbers = #tpu.dot_dimension_numbers<[1], [0], [0], [1], [0, 0, 1, 1], [], []>} : vector<256x4xbf16>, vector<4x8xbf16>, vector<256x8xf32> -> vector<256x8xf32>
    %49 = arith.addf %43, %48 : vector<256x8xf32>
    %50 = vector.extract_strided_slice %0 {offsets = [0, 2, 2, 0], sizes = [1, 16, 16, 4], strides = [1, 1, 1, 1]} : vector<1x18x18x4xbf16> to vector<1x16x16x4xbf16>
    %51 = vector.shape_cast %50 : vector<1x16x16x4xbf16> to vector<256x4xbf16>
    %c8 = arith.constant 8 : index
    %c0_28 = arith.constant 0 : index
    %c0_29 = arith.constant 0 : index
    %52 = vector.load %arg2[%c8, %c0_28, %c0_29] : memref<9x4x8xbf16, #tpu.memory_space<vmem>>, vector<1x4x8xbf16>
    %53 = vector.shape_cast %52 : vector<1x4x8xbf16> to vector<4x8xbf16>
    %cst_30 = arith.constant dense<0.000000e+00> : vector<256x8xf32>
    %54 = tpu.matmul %51, %53, %cst_30 {dimension_numbers = #tpu.dot_dimension_numbers<[1], [0], [0], [1], [0, 0, 1, 1], [], []>} : vector<256x4xbf16>, vector<4x8xbf16>, vector<256x8xf32> -> vector<256x8xf32>
    %55 = arith.addf %49, %54 : vector<256x8xf32>
    %c0_31 = arith.constant 0 : index
    %c0_32 = arith.constant 0 : index
    %56 = vector.load %arg3[%c0_31, %c0_32] : memref<1x8xf32, #tpu.memory_space<vmem>>, vector<1x8xf32>
    %57 = vector.broadcast %56 : vector<1x8xf32> to vector<256x8xf32>
    %58 = arith.addf %55, %57 : vector<256x8xf32>
    %cst_33 = arith.constant 0.000000e+00 : f32
    %59 = vector.broadcast %cst_33 : f32 to vector<256x8xf32>
    %60 = arith.cmpf ogt, %58, %59 : vector<256x8xf32>
    %cst_34 = arith.constant 0.00999999977 : f32
    %61 = vector.broadcast %cst_34 : f32 to vector<256x8xf32>
    %62 = arith.mulf %61, %58 : vector<256x8xf32>
    %63 = arith.select %60, %58, %62 : vector<256x8xi1>, vector<256x8xf32>
    %64 = vector.shape_cast %63 : vector<256x8xf32> to vector<1x16x16x8xf32>
    %c0_35 = arith.constant 0 : index
    %c0_36 = arith.constant 0 : index
    %c0_37 = arith.constant 0 : index
    %c0_38 = arith.constant 0 : index
    %65 = vector.load %arg4[%c0_35, %c0_36, %c0_37, %c0_38] : memref<1x16x16x8xf32, #tpu.memory_space<vmem>>, vector<1x16x16x8xf32>
    tpu.vector_store %arg4[%c0_35, %c0_36, %c0_37, %c0_38], %64 {strides = array<i32>} : memref<1x16x16x8xf32, #tpu.memory_space<vmem>>, vector<1x16x16x8xf32>,
    return
  }
  func.func @transform_0(%arg0: i32) -> (i32, i32, i32, i32) {
    %c0_i32 = arith.constant 0 : i32
    %c0_i32_0 = arith.constant 0 : i32
    %c0_i32_1 = arith.constant 0 : i32
    %c0_i32_2 = arith.constant 0 : i32
    return %arg0, %c0_i32, %c0_i32_0, %c0_i32_1 : i32, i32, i32, i32
  }
  func.func @transform_1(%arg0: i32) -> (i32, i32, i32) {
    %c0_i32 = arith.constant 0 : i32
    %c0_i32_0 = arith.constant 0 : i32
    %c0_i32_1 = arith.constant 0 : i32
    %c0_i32_2 = arith.constant 0 : i32
    return %c0_i32, %c0_i32_0, %c0_i32_1 : i32, i32, i32
  }
  func.func @transform_2(%arg0: i32) -> (i32, i32) {
    %c0_i32 = arith.constant 0 : i32
    %c0_i32_0 = arith.constant 0 : i32
    %c0_i32_1 = arith.constant 0 : i32
    return %c0_i32, %c0_i32_0 : i32, i32
  }
  func.func @transform_3(%arg0: i32) -> (i32, i32, i32, i32) {
    %c0_i32 = arith.constant 0 : i32
    %c0_i32_0 = arith.constant 0 : i32
    %c0_i32_1 = arith.constant 0 : i32
    %c0_i32_2 = arith.constant 0 : i32
    return %arg0, %c0_i32, %c0_i32_0, %c0_i32_1 : i32, i32, i32, i32
  }
}

</mosaic_0001>

<bundles_post_ra>
// kernel: conv2d_layer.1
= control target key start
LH: loop header
LB: loop body
LE: loop exit
PB: predicated region body
PF: predicated region fallthrough
CT: control target
= control target key end

     0   :  { %s2779_s12 = smov 0   ;;  %s3948_s0 = inlined_call_operand.vmem [shape: bf16[2,18,18,4], index: 0, kind: input, shape index: {}]   ;;  %s3949_s1 = inlined_call_operand.vmem [shape: bf16[9,4,8], index: 1, kind: input, shape index: {}]   ;;  %s3950_s2 = inlined_call_operand.vmem [shape: f32[1,8], index: 2, kind: input, shape index: {}]   ;;  %s3951_s3 = inlined_call_operand.vmem [shape: f32[2,16,16,8], index: 3, kind: output, shape index: {}]  }
   0x1 LB: > { %s2459_s13 = sadd.s32 4294967295, %s2757_s12   ;;  %p2463_p0 = scmp.ge.s32.totalorder %s2757_s12, 1  ;;  %s2757_s12 = sphi %s2779_s12, %s13_s12  }
   0x2   : > { %p137_p1 = scmp.lt.s32.totalorder %s2757_s12, 3 }
   0x4   : > { %p138_p2 = pnand %p2463_p0, %p137_p1 }
   0x6   : > { %141 = sbr.rel (%p138_p2) target bundleno = 759 (0x2f7), region = 32 }
   0xb   : > { %v2467_v0 = vld [vmem:[%s3949_s1 + $0x2] sm:$0x3]  ;;  %vm713_vm0 = vcmask 1041408   ;;  %p161_p3 = scmp.lt.s32.totalorder %s2459_s13, 1  ;;  %v2580_v2 = vld [vmem:[%s3949_s1 + $0x4] sm:$0x3] }
   0xc   : > { %v715_v1 = vsel %vm713_vm0, %v2467_v0, 0  ;;  %v1256_v3 = vsel %vm713_vm0, %v2580_v2, 0  ;;  %v2597_v4 = vld [vmem:[%s3949_s1 + $0x6] sm:$0x3]  ;;  %v226_v5 = vld [vmem:[%s3949_s1] sm:$0x3] }
   0xd   : > { %2730 = vmatpush.bf16.msra.mxu1 %v715_v1  ;;  %2731 = vmatpush.bf16.msra.mxu2 %v715_v1  ;;  %s4091_s13 = smov (!%p161_p3, %s2459_s13), 1  ;;  %v2618_v6 = vld [vmem:[%s3949_s1 + $0x8] sm:$0x3]  ;;  %v1390_v7 = vsel %vm713_vm0, %v2597_v4, 0  ;;  %v935_v8 = vsel %vm713_vm0, %v226_v5, 0  ;;  %vm664_vm4 = vcmask 31744  }
   0xe   : > { %2732 = vmatpush.bf16.msra.mxu3 %v715_v1  ;;  %724 = vmatpush.bf16.msra.mxu0 %v715_v1  ;;  %s2733_s24 = smul.u32 216, %s4091_s13  ;;  %v1546_v9 = vsel %vm713_vm0, %v2618_v6, 0  ;;  %vm227_vm1 = vsmask.f32 3328  ;;  %vm228_vm2 = vsmask.f32 7440 }
   0xf   : > { %vm2840_vm3 = vmor %vm227_vm1, %vm228_vm2  ;;  %vm1042_vm5 = vcmask 1042432   ;;  %vm1043_vm6 = vcmask 1046532   ;;  %s2711_s11 = sshll.u32 %s4091_s13, 8  ;;  %vm2371_vm9 = vcmask 64512  }
  0x10   : > { %s2813_s27 = scalar_lea.vmem %s3948_s0, %s2733_s24  ;;  %vm3143_vm7 = vmor %vm1042_vm5, %vm1043_vm6  ;;  %s3740_s16 = scalar_lea.vmem %s3951_s3, %s2711_s11 }
  0x11   : > { %1265 = vmatpush.bf16.msrb.mxu2 %v1256_v3  ;;  %944 = vmatpush.bf16.msrb.mxu1 %v935_v8  ;;  %v2816_v10 = vld [vmem:[%s2813_s27 + $0x30] sm:$0xf]  ;;  %v2819_v11 = vld [vmem:[%s2813_s27 + $0x34] sm:$0xf]  ;;  %v2822_v12 = vld [vmem:[%s2813_s27 + $0x38] sm:$0x1] }
  0x12   : > { %1399 = vmatpush.bf16.msrb.mxu3 %v1390_v7  ;;  %1555 = vmatpush.bf16.msrb.mxu0 %v1546_v9  ;;  %v327_v13 = vshrl.u32 %v2816_v10, 16  ;;  %v330_v14 = vshll.u32 %v2816_v10, 16  ;;  %v336_v15 = vshll.u32 %v2819_v11, 16  ;;  %v340_v16 = vshrl.u32 %v2819_v11, 16  ;;  %v196_v17 = vld [vmem:[%s2813_s27 + $0x60] sm:$0xf] }
  0x13   : > { %v346_v18 = vshll.u32 %v2822_v12, 16  ;;  %v2831_v19 = vld [vmem:[%s2813_s27 + $0x64] sm:$0xf]  ;;  %v198_v20 = vld [vmem:[%s2813_s27 + $0x68] sm:$0x1]  ;;  %v423_v21 = vshrl.u32 %v196_v17, 16 }
  0x14   : > { %v329_v22 = vrot.slane %v327_v13, 4  ;;  %v332_v23 = vrot.slane %v330_v14, 5  ;;  %v338_v24 = vrot.slane %v336_v15, 5  ;;  %v342_v25 = vrot.slane %v340_v16, 4  ;;  %v208_v26 = vld [vmem:[%s2813_s27 + $0x90] sm:$0xf] }
  0x15   : > { %v348_v27 = vrot.slane %v346_v18, 5  ;;  %v425_v28 = vrot.slane %v423_v21, 4  ;;  %v426_v29 = vshll.u32 %v196_v17, 16  ;;  %v432_v30 = vshll.u32 %v2831_v19, 16  ;;  %v209_v35 = vld [vmem:[%s2813_s27 + $0x94] sm:$0xf] }
  0x16   : > { %v333_v31 = vor.u32 %v332_v23, %v329_v22  ;;  %v343_v32 = vor.u32 %v342_v25, %v338_v24  ;;  %v436_v33 = vshrl.u32 %v2831_v19, 16  ;;  %v442_v34 = vshll.u32 %v198_v20, 16  ;;  %v210_v45 = vld [vmem:[%s2813_s27 + $0x98] sm:$0x1]  ;;  %v2850_v61 = vld [vmem:[%s2813_s27] sm:$0xf] }
  0x17   : > { %v428_v37 = vrot.slane %v426_v29, 5  ;;  %v434_v38 = vrot.slane %v432_v30, 5  ;;  %v519_v39 = vshrl.u32 %v208_v26, 16  ;;  %v522_v47 = vshll.u32 %v208_v26, 16  ;;  %v2857_v1 = vld [vmem:[%s2813_s27 + $0x4] sm:$0xf] }
  0x18   : > { %v334_v40 = vrot.slane %v333_v31, 4  ;;  %v344_v41 = vrot.slane %v343_v32, 4  ;;  %v438_v42 = vrot.slane %v436_v33, 4  ;;  %v444_v43 = vrot.slane %v442_v34, 5  ;;  %v2860_v2 = vld [vmem:[%s2813_s27 + $0x8] sm:$0x1] }
  0x19   : > { %v429_v44 = vor.u32 %v428_v37, %v425_v28  ;;  %v521_v46 = vrot.slane %v519_v39, 4  ;;  %v528_v48 = vshll.u32 %v209_v35, 16  ;;  %v532_v52 = vshrl.u32 %v209_v35, 16  ;;  %v2876_v23 = vld [vmem:[%s2813_s27 + $0x3c] sm:$0xf] }
  0x1a   : > { %v339_v49 = vsel %vm2840_vm3, %v334_v40, %v338_v24  ;;  %v349_v50 = vsel %vm2840_vm3, %v344_v41, %v348_v27  ;;  %v439_v51 = vor.u32 %v438_v42, %v434_v38  ;;  %v524_v56 = vrot.slane %v522_v47, 5  ;;  %v2879_v24 = vld [vmem:[%s2813_s27 + $0x40] sm:$0xf]  ;;  %v2884_v29 = vld [vmem:[%s2813_s27 + $0x44] sm:$0x1] }
  0x1b   : > { %v624_v53 = vunpack.c.l.b16 %v339_v49  ;;  %v625_v54 = vunpack.c.l.b16 %v349_v50  ;;  %v430_v55 = vrot.slane %v429_v44, 4  ;;  %v530_v58 = vrot.slane %v528_v48, 5  ;;  %v2899_v47 = vld [vmem:[%s2813_s27 + $0x70] sm:$0xf] }
  0x1c   : > { %v440_v57 = vrot.slane %v439_v51, 4  ;;  %v534_v59 = vrot.slane %v532_v52, 4  ;;  %v538_v60 = vshll.u32 %v210_v45, 16  ;;  %v525_v0 = vor.u32 %v524_v56, %v521_v46  ;;  %v2906_v51 = vld [vmem:[%s2813_s27 + $0x74] sm:$0x1] }
  0x1d   : > { %v2852_v62 = vpack.c.b16 %v625_v54, %v624_v53  ;;  %v435_v63 = vsel %vm2840_vm3, %v430_v55, %v434_v38  ;;  %v231_v9 = vshrl.u32 %v2850_v61, 16  ;;  %v234_v13 = vshll.u32 %v2850_v61, 16  ;;  %v2892_v38 = vld [vmem:[%s2813_s27 + $0x6c] sm:$0xf] }
  0x1e   : > { %v445_v3 = vsel %vm2840_vm3, %v440_v57, %v444_v43  ;;  %v632_v4 = vunpack.c.l.b16 %v435_v63  ;;  %v535_v5 = vor.u32 %v534_v59, %v530_v58  ;;  %v540_v6 = vrot.slane %v538_v60, 5 }
  0x1f   : > { %2472 = vmatmul.msk.bf16.vlgmr.msra.gmra.mxu1 %vm664_vm4, %v2852_v62  ;;  %v633_v7 = vunpack.c.l.b16 %v445_v3  ;;  %v526_v8 = vrot.slane %v525_v0, 4  ;;  %v240_v15 = vshll.u32 %v2857_v1, 16  ;;  %v244_v16 = vshrl.u32 %v2857_v1, 16 }
  0x20   : > { %v536_v14 = vrot.slane %v535_v5, 4  ;;  %v250_v17 = vshll.u32 %v2860_v2, 16  ;;  %v233_v21 = vrot.slane %v231_v9, 4  ;;  %v236_v22 = vrot.slane %v234_v13, 5  ;;  %v211_v5 = vld [vmem:[%s2813_s27 + $0x9c] sm:$0xf] }
  0x21   : > { %v2871_v18 = vpack.c.b16 %v633_v7, %v632_v4  ;;  %v531_v20 = vsel %vm2840_vm3, %v526_v8, %v530_v58  ;;  %v242_v27 = vrot.slane %v240_v15, 5  ;;  %v246_v28 = vrot.slane %v244_v16, 4  ;;  %v212_v9 = vld [vmem:[%s2813_s27 + $0xa0] sm:$0xf] }
  0x22   : > { %v541_v25 = vsel %vm2840_vm3, %v536_v14, %v540_v6  ;;  %v640_v26 = vunpack.c.l.b16 %v531_v20  ;;  %v237_v31 = vor.u32 %v236_v22, %v233_v21  ;;  %v252_v32 = vrot.slane %v250_v17, 5  ;;  %v213_v17 = vld [vmem:[%s2813_s27 + $0xa4] sm:$0x1] }
  0x23   : > { %3994 = vst [vmem:[#allocation2_spill] sm:$0xff] %v2871_v18  ;;  %2476 = vmatmul.msk.bf16.vlgmr.msra.gmra.mxu2 %vm664_vm4, %v2871_v18  ;;  %v641_v30 = vunpack.c.l.b16 %v541_v25  ;;  %v247_v33 = vor.u32 %v246_v28, %v242_v27  ;;  %v351_v34 = vshrl.u32 %v2876_v23, 16  ;;  %v354_v35 = vshll.u32 %v2876_v23, 16 }
  0x24   : > { %v360_v37 = vshll.u32 %v2879_v24, 16  ;;  %v238_v40 = vrot.slane %v237_v31, 4  ;;  %v364_v41 = vshrl.u32 %v2879_v24, 16  ;;  %v370_v42 = vshll.u32 %v2884_v29, 16 }
  0x25   : > { %v2894_v39 = vpack.c.b16 %v641_v30, %v640_v26  ;;  %v248_v43 = vrot.slane %v247_v33, 4  ;;  %v353_v44 = vrot.slane %v351_v34, 4  ;;  %v356_v45 = vrot.slane %v354_v35, 5  ;;  %v2924_v35 = vld [vmem:[%s2813_s27 + $0xc] sm:$0xf] }
  0x26   : > { %v362_v46 = vrot.slane %v360_v37, 5  ;;  %v243_v48 = vsel %vm2840_vm3, %v238_v40, %v242_v27  ;;  %v366_v49 = vrot.slane %v364_v41, 4  ;;  %v372_v50 = vrot.slane %v370_v42, 5 }
  0x27   : > { %3995 = vst [vmem:[#allocation3_spill] sm:$0xff] %v2894_v39  ;;  %2480 = vmatmul.msk.bf16.vlgmr.msra.gmra.mxu3 %vm664_vm4, %v2894_v39  ;;  %v447_v52 = vshrl.u32 %v2892_v38, 16  ;;  %v253_v53 = vsel %vm2840_vm3, %v248_v43, %v252_v32  ;;  %v616_v54 = vunpack.c.l.b16 %v243_v48  ;;  %v357_v55 = vor.u32 %v356_v45, %v353_v44  ;;  %v2931_v43 = vld [vmem:[%s2813_s27 + $0x10] sm:$0xf]  ;;  %v2934_v48 = vld [vmem:[%s2813_s27 + $0x14] sm:$0x1] }
  0x28   : > { %v450_v56 = vshll.u32 %v2892_v38, 16  ;;  %v617_v57 = vunpack.c.l.b16 %v253_v53  ;;  %v367_v58 = vor.u32 %v366_v49, %v362_v46  ;;  %v456_v60 = vshll.u32 %v2899_v47, 16  ;;  %v3111_v39 = vld [vmem:[%s2813_s27 + $0x2c] sm:$0x1] }
  0x29   : > { %v449_v59 = vrot.slane %v447_v52, 4  ;;  %v358_v63 = vrot.slane %v357_v55, 4  ;;  %v460_v3 = vshrl.u32 %v2899_v47, 16  ;;  %v466_v4 = vshll.u32 %v2906_v51, 16 }
  0x2a   : > { %v452_v0 = vrot.slane %v450_v56, 5  ;;  %v648_v6 = vpack.c.b16 %v617_v57, %v616_v54  ;;  %v368_v7 = vrot.slane %v367_v58, 4  ;;  %v458_v8 = vrot.slane %v456_v60, 5  ;;  %v2944_v58 = vld [vmem:[%s2813_s27 + $0x48] sm:$0xf] }
  0x2b   : > { %v363_v13 = vsel %vm2840_vm3, %v358_v63, %v362_v46  ;;  %v462_v15 = vrot.slane %v460_v3, 4  ;;  %v468_v16 = vrot.slane %v466_v4, 5  ;;  %v543_v22 = vshrl.u32 %v211_v5, 16  ;;  %v2949_v3 = vld [vmem:[%s2813_s27 + $0x4c] sm:$0xf] }
  0x2c   : > { %v453_v14 = vor.u32 %v452_v0, %v449_v59  ;;  %2468 = vmatmul.msk.bf16.vlgmr.msra.gmra.mxu0 %vm664_vm4, %v648_v6  ;;  %v373_v20 = vsel %vm2840_vm3, %v368_v7, %v372_v50  ;;  %v626_v21 = vunpack.c.l.b16 %v363_v13  ;;  %v546_v25 = vshll.u32 %v211_v5, 16 }
  0x2d   : > { %v627_v26 = vunpack.c.l.b16 %v373_v20  ;;  %v463_v28 = vor.u32 %v462_v15, %v458_v8  ;;  %v552_v30 = vshll.u32 %v212_v9, 16  ;;  %v545_v31 = vrot.slane %v543_v22, 4  ;;  %v2956_v15 = vld [vmem:[%s2813_s27 + $0x50] sm:$0x1] }
  0x2e   : > { %v454_v27 = vrot.slane %v453_v14, 4  ;;  %v548_v32 = vrot.slane %v546_v25, 5  ;;  %v556_v33 = vshrl.u32 %v212_v9, 16  ;;  %v562_v34 = vshll.u32 %v213_v17, 16 }
  0x2f   : > { %v2926_v37 = vpack.c.b16 %v627_v26, %v626_v21  ;;  %v464_v41 = vrot.slane %v463_v28, 4  ;;  %v554_v42 = vrot.slane %v552_v30, 5  ;;  %v255_v52 = vshrl.u32 %v2924_v35, 16  ;;  %v2967_v28 = vld [vmem:[%s2813_s27 + $0x78] sm:$0xf] }
  0x30   : > { %v459_v40 = vsel %vm2840_vm3, %v454_v27, %v458_v8  ;;  %v549_v45 = vor.u32 %v548_v32, %v545_v31  ;;  %v558_v46 = vrot.slane %v556_v33, 4  ;;  %v564_v50 = vrot.slane %v562_v34, 5  ;;  %v2971_v34 = vld [vmem:[%s2813_s27 + $0x7c] sm:$0xf] }
  0x31   : > { %v634_v44 = vunpack.c.l.b16 %v459_v40  ;;  %2473 = vmatmul.msk.bf16.gmra.mxu1 %vm664_vm4, %v2926_v37  ;;  %v469_v49 = vsel %vm2840_vm3, %v464_v41, %v468_v16  ;;  %v258_v53 = vshll.u32 %v2924_v35, 16  ;;  %v264_v57 = vshll.u32 %v2931_v43, 16 }
  0x32   : > { %v635_v54 = vunpack.c.l.b16 %v469_v49  ;;  %v550_v55 = vrot.slane %v549_v45, 4  ;;  %v559_v56 = vor.u32 %v558_v46, %v554_v42  ;;  %v257_v59 = vrot.slane %v255_v52, 4 }
  0x33   : > { %v260_v60 = vrot.slane %v258_v53, 5  ;;  %v268_v63 = vshrl.u32 %v2931_v43, 16  ;;  %v274_v0 = vshll.u32 %v2934_v48, 16  ;;  %v266_v7 = vrot.slane %v264_v57, 5 }
  0x34   : > { %v2951_v4 = vpack.c.b16 %v635_v54, %v634_v44  ;;  %v555_v5 = vsel %vm2840_vm3, %v550_v55, %v554_v42  ;;  %v560_v6 = vrot.slane %v559_v56, 4  ;;  %v375_v17 = vshrl.u32 %v2944_v58, 16 }
  0x35   : > { %v642_v8 = vunpack.c.l.b16 %v555_v5  ;;  %v261_v9 = vor.u32 %v260_v60, %v257_v59  ;;  %v270_v13 = vrot.slane %v268_v63, 4  ;;  %v276_v14 = vrot.slane %v274_v0, 5 }
  0x36   : > { %2477 = vmatmul.msk.bf16.gmra.mxu2 %vm664_vm4, %v2951_v4  ;;  %v565_v16 = vsel %vm2840_vm3, %v560_v6, %v564_v50  ;;  %v378_v20 = vshll.u32 %v2944_v58, 16  ;;  %v384_v21 = vshll.u32 %v2949_v3, 16  ;;  %v388_v27 = vshrl.u32 %v2949_v3, 16  ;;  %v2978_v50 = vld [vmem:[%s2813_s27 + $0x80] sm:$0x1] }
  0x37   : > { %v643_v22 = vunpack.c.l.b16 %v565_v16  ;;  %v262_v25 = vrot.slane %v261_v9, 4  ;;  %v271_v26 = vor.u32 %v270_v13, %v266_v7  ;;  %v377_v30 = vrot.slane %v375_v17, 4  ;;  %v2997_v16 = vld [vmem:[%s2813_s27 + $0xac] sm:$0xf]  ;;  %v3000_v17 = vld [vmem:[%s2813_s27 + $0xb0] sm:$0x1] }
  0x38   : > { %v380_v31 = vrot.slane %v378_v20, 5  ;;  %v386_v32 = vrot.slane %v384_v21, 5  ;;  %v394_v33 = vshll.u32 %v2956_v15, 16  ;;  %v390_v44 = vrot.slane %v388_v27, 4  ;;  %3998 = vst [vmem:[#allocation6_spill] sm:$0xff] %v2997_v16 }
  0x39   : > { %v2973_v40 = vpack.c.b16 %v643_v22, %v642_v8  ;;  %v267_v41 = vsel %vm2840_vm3, %v262_v25, %v266_v7  ;;  %v272_v42 = vrot.slane %v271_v26, 4  ;;  %v471_v52 = vshrl.u32 %v2967_v28, 16  ;;  %v2990_v8 = vld [vmem:[%s2813_s27 + $0xa8] sm:$0xf]  ;;  %3999 = vst [vmem:[#allocation7_spill] sm:$0xff] %v3000_v17 }
  0x3a   : > { %v618_v45 = vunpack.c.l.b16 %v267_v41  ;;  %v381_v46 = vor.u32 %v380_v31, %v377_v30  ;;  %v396_v49 = vrot.slane %v394_v33, 5  ;;  %v391_v54 = vor.u32 %v390_v44, %v386_v32  ;;  %3997 = vst [vmem:[#allocation5_spill] sm:$0xff] %v2990_v8 }
  0x3b   : > { %3996 = vst [vmem:[#allocation4_spill] sm:$0xff] %v2973_v40  ;;  %2481 = vmatmul.msk.bf16.gmra.mxu3 %vm664_vm4, %v2973_v40  ;;  %v277_v53 = vsel %vm2840_vm3, %v272_v42, %v276_v14  ;;  %v474_v55 = vshll.u32 %v2967_v28, 16  ;;  %v480_v56 = vshll.u32 %v2971_v34, 16  ;;  %v473_v60 = vrot.slane %v471_v52, 4  ;;  %v3014_v52 = vld [vmem:[%s2813_s27 + $0x18] sm:$0xf] }
  0x3c   : > { %v619_v57 = vunpack.c.l.b16 %v277_v53  ;;  %v382_v59 = vrot.slane %v381_v46, 4  ;;  %v484_v63 = vshrl.u32 %v2971_v34, 16  ;;  %v392_v0 = vrot.slane %v391_v54, 4  ;;  %v3100_v40 = vld [vmem:[%s2813_s27 + $0x24] sm:$0xf] }
  0x3d   : > { %v476_v5 = vrot.slane %v474_v55, 5  ;;  %v482_v6 = vrot.slane %v480_v56, 5  ;;  %v490_v7 = vshll.u32 %v2978_v50, 16  ;;  %v567_v30 = vshrl.u32 %v2990_v8, 16  ;;  %v3019_v56 = vld [vmem:[%s2813_s27 + $0x1c] sm:$0xf] }
  0x3e   : > { %v2992_v9 = vpack.c.b16 %v619_v57, %v618_v45  ;;  %v387_v13 = vsel %vm2840_vm3, %v382_v59, %v386_v32  ;;  %v486_v14 = vrot.slane %v484_v63, 4  ;;  %v397_v20 = vsel %vm2840_vm3, %v392_v0, %v396_v49  ;;  %v3022_v57 = vld [vmem:[%s2813_s27 + $0x20] sm:$0x1] }
  0x3f   : > { %v628_v21 = vunpack.c.l.b16 %v387_v13  ;;  %v477_v22 = vor.u32 %v476_v5, %v473_v60  ;;  %v492_v25 = vrot.slane %v490_v7, 5  ;;  %v629_v26 = vunpack.c.l.b16 %v397_v20 }
  0x40   : > { %2469 = vmatmul.msk.bf16.gmra.mxu0 %vm664_vm4, %v2992_v9  ;;  %v487_v27 = vor.u32 %v486_v14, %v482_v6  ;;  %v570_v31 = vshll.u32 %v2990_v8, 16  ;;  %v576_v33 = vshll.u32 %v2997_v16, 16  ;;  %v580_v41 = vshrl.u32 %v2997_v16, 16 }
  0x41   : > { %v478_v32 = vrot.slane %v477_v22, 4  ;;  %v586_v42 = vshll.u32 %v3000_v17, 16  ;;  %v3011_v44 = vpack.c.b16 %v629_v26, %v628_v21  ;;  %v569_v46 = vrot.slane %v567_v30, 4  ;;  %v3034_v26 = vld [vmem:[%s2813_s27 + $0x54] sm:$0xf] }
  0x42   : > { %v488_v45 = vrot.slane %v487_v27, 4  ;;  %v572_v49 = vrot.slane %v570_v31, 5  ;;  %v578_v54 = vrot.slane %v576_v33, 5  ;;  %v582_v55 = vrot.slane %v580_v41, 4  ;;  %v3078_v17 = vld [vmem:[%s2813_s27 + $0xb4] sm:$0xf] }
  0x43   : > { %4000 = vst [vmem:[#allocation8_spill] sm:$0xff] %v3011_v44  ;;  %v483_v53 = vsel %vm2840_vm3, %v478_v32, %v482_v6  ;;  %2474 = vmatmul.msk.bf16.gmra.mxu1 %vm664_vm4, %v3011_v44  ;;  %v588_v0 = vrot.slane %v586_v42, 5  ;;  %v279_v6 = vshrl.u32 %v3014_v52, 16  ;;  %v282_v13 = vshll.u32 %v3014_v52, 16  ;;  %v3039_v32 = vld [vmem:[%s2813_s27 + $0x58] sm:$0xf] }
  0x44   : > { %v493_v59 = vsel %vm2840_vm3, %v488_v45, %v492_v25  ;;  %v636_v60 = vunpack.c.l.b16 %v483_v53  ;;  %v573_v63 = vor.u32 %v572_v49, %v569_v46  ;;  %v583_v7 = vor.u32 %v582_v55, %v578_v54  ;;  %v3044_v46 = vld [vmem:[%s2813_s27 + $0x5c] sm:$0x1]  ;;  %4003 = vst [vmem:[#allocation11_spill] sm:$0xff] %v3078_v17 }
  0x45   : > { %v637_v5 = vunpack.c.l.b16 %v493_v59  ;;  %v288_v20 = vshll.u32 %v3019_v56, 16  ;;  %v292_v21 = vshrl.u32 %v3019_v56, 16  ;;  %v298_v22 = vshll.u32 %v3022_v57, 16 }
  0x46   : > { %v574_v14 = vrot.slane %v573_v63, 4  ;;  %v584_v27 = vrot.slane %v583_v7, 4  ;;  %v281_v30 = vrot.slane %v279_v6, 4  ;;  %v284_v31 = vrot.slane %v282_v13, 5  ;;  %v3054_v7 = vld [vmem:[%s2813_s27 + $0x84] sm:$0xf] }
  0x47   : > { %v3036_v25 = vpack.c.b16 %v637_v5, %v636_v60  ;;  %v290_v41 = vrot.slane %v288_v20, 5  ;;  %v294_v42 = vrot.slane %v292_v21, 4  ;;  %v300_v45 = vrot.slane %v298_v22, 5  ;;  %4001 = vst [vmem:[#allocation9_spill] sm:$0xff] %v3054_v7 }
  0x48   : > { %v579_v33 = vsel %vm2840_vm3, %v574_v14, %v578_v54  ;;  %v589_v49 = vsel %vm2840_vm3, %v584_v27, %v588_v0  ;;  %v285_v55 = vor.u32 %v284_v31, %v281_v30  ;;  %v399_v59 = vshrl.u32 %v3034_v26, 16  ;;  %v3061_v30 = vld [vmem:[%s2813_s27 + $0x88] sm:$0xf] }
  0x49   : > { %2478 = vmatmul.msk.bf16.gmra.mxu2 %vm664_vm4, %v3036_v25  ;;  %v644_v53 = vunpack.c.l.b16 %v579_v33  ;;  %v645_v60 = vunpack.c.l.b16 %v589_v49  ;;  %v295_v63 = vor.u32 %v294_v42, %v290_v41  ;;  %v402_v54 = vshll.u32 %v3034_v26, 16  ;;  %v3066_v49 = vld [vmem:[%s2813_s27 + $0x8c] sm:$0x1] }
  0x4a   : > { %v408_v5 = vshll.u32 %v3039_v32, 16  ;;  %v286_v6 = vrot.slane %v285_v55, 4  ;;  %v401_v13 = vrot.slane %v399_v59, 4  ;;  %v412_v14 = vshrl.u32 %v3039_v32, 16 }
  0x4b   : > { %v418_v0 = vshll.u32 %v3044_v46, 16  ;;  %v3058_v20 = vpack.c.b16 %v645_v60, %v644_v53  ;;  %v296_v21 = vrot.slane %v295_v63, 4  ;;  %v404_v22 = vrot.slane %v402_v54, 5 }
  0x4c   : > { %v410_v27 = vrot.slane %v408_v5, 5  ;;  %v291_v31 = vsel %vm2840_vm3, %v286_v6, %v290_v41  ;;  %v414_v33 = vrot.slane %v412_v14, 4  ;;  %v495_v55 = vshrl.u32 %v3054_v7, 16 }
  0x4d   : > { %4002 = vst [vmem:[#allocation10_spill] sm:$0xff] %v3058_v20  ;;  %v420_v42 = vrot.slane %v418_v0, 5  ;;  %2482 = vmatmul.msk.bf16.gmra.mxu3 %vm664_vm4, %v3058_v20  ;;  %v301_v53 = vsel %vm2840_vm3, %v296_v21, %v300_v45  ;;  %v620_v59 = vunpack.c.l.b16 %v291_v31  ;;  %v405_v60 = vor.u32 %v404_v22, %v401_v13  ;;  %v3083_v22 = vld [vmem:[%s2813_s27 + $0xb8] sm:$0xf] }
  0x4e   : > { %v498_v63 = vshll.u32 %v3054_v7, 16  ;;  %v621_v54 = vunpack.c.l.b16 %v301_v53  ;;  %v415_v41 = vor.u32 %v414_v33, %v410_v27  ;;  %v497_v5 = vrot.slane %v495_v55, 4  ;;  %4004 = vst [vmem:[#allocation12_spill] sm:$0xff] %v3083_v22 }
  0x4f   : > { %v504_v6 = vshll.u32 %v3061_v30, 16  ;;  %v406_v14 = vrot.slane %v405_v60, 4  ;;  %v508_v8 = vshrl.u32 %v3061_v30, 16  ;;  %v514_v20 = vshll.u32 %v3066_v49, 16  ;;  %v3088_v60 = vld [vmem:[%s2813_s27 + $0xbc] sm:$0x1] }
  0x50   : > { %v500_v0 = vrot.slane %v498_v63, 5  ;;  %v3080_v45 = vpack.c.b16 %v621_v54, %v620_v59  ;;  %v416_v21 = vrot.slane %v415_v41, 4  ;;  %4005 = vst [vmem:[#allocation13_spill] sm:$0xff] %v3088_v60  ;;  %v591_v54 = vshrl.u32 %v3078_v17, 16 }
  0x51   : > { %v506_v13 = vrot.slane %v504_v6, 5  ;;  %v411_v31 = vsel %vm2840_vm3, %v406_v14, %v410_v27  ;;  %v510_v55 = vrot.slane %v508_v8, 4  ;;  %v516_v53 = vrot.slane %v514_v20, 5 }
  0x52   : > { %v501_v33 = vor.u32 %v500_v0, %v497_v5  ;;  %2470 = vmatmul.msk.bf16.gmra.mxu0 %vm664_vm4, %v3080_v45  ;;  %v421_v59 = vsel %vm2840_vm3, %v416_v21, %v420_v42  ;;  %v630_v63 = vunpack.c.l.b16 %v411_v31  ;;  %v594_v41 = vshll.u32 %v3078_v17, 16 }
  0x53   : > { %v631_v6 = vunpack.c.l.b16 %v421_v59  ;;  %v511_v5 = vor.u32 %v510_v55, %v506_v13  ;;  %v600_v8 = vshll.u32 %v3083_v22, 16  ;;  %v593_v20 = vrot.slane %v591_v54, 4 }
  0x54   : > { %v502_v27 = vrot.slane %v501_v33, 4  ;;  %v596_v14 = vrot.slane %v594_v41, 5  ;;  %v604_v0 = vshrl.u32 %v3083_v22, 16  ;;  %v610_v16 = vshll.u32 %v3088_v60, 16  ;;  %v3107_v33 = vld [vmem:[%s2813_s27 + $0x28] sm:$0xf] }
  0x55   : > { %v3102_v42 = vpack.c.b16 %v631_v6, %v630_v63  ;;  %v512_v31 = vrot.slane %v511_v5, 4  ;;  %v602_v59 = vrot.slane %v600_v8, 5  ;;  %v1050_v55 = vrot.slane %v2860_v2, 5 }
  0x56   : > { %v507_v21 = vsel %vm2840_vm3, %v502_v27, %v506_v13  ;;  %v597_v54 = vor.u32 %v596_v14, %v593_v20  ;;  %v606_v41 = vrot.slane %v604_v0, 4  ;;  %v612_v6 = vrot.slane %v610_v16, 5 }
  0x57   : > { %4006 = vst [vmem:[#allocation14_spill] sm:$0xff] %v3102_v42  ;;  %v638_v17 = vunpack.c.l.b16 %v507_v21  ;;  %2475 = vmatmul.msk.bf16.gmra.mxu1 %vm664_vm4, %v3102_v42  ;;  %v517_v63 = vsel %vm2840_vm3, %v512_v31, %v516_v53  ;;  %v303_v13 = vshrl.u32 %v3100_v40, 16  ;;  %v306_v27 = vshll.u32 %v3100_v40, 16 }
  0x58   : > { %v639_v5 = vunpack.c.l.b16 %v517_v63  ;;  %v598_v8 = vrot.slane %v597_v54, 4  ;;  %v607_v60 = vor.u32 %v606_v41, %v602_v59  ;;  %v312_v2 = vshll.u32 %v3107_v33, 16  ;;  %v2653_v54 = vld [vmem:[%s3949_s1 + $0xc] sm:$0x3]  ;;  %v2674_v41 = vld [vmem:[%s3949_s1 + $0xe] sm:$0x3] }
  0x59   : > { %v305_v20 = vrot.slane %v303_v13, 4  ;;  %v308_v14 = vrot.slane %v306_v27, 5  ;;  %v316_v0 = vshrl.u32 %v3107_v33, 16  ;;  %v322_v21 = vshll.u32 %v3111_v39, 16 }
  0x5a   : > { %v3122_v22 = vpack.c.b16 %v639_v5, %v638_v17  ;;  %v603_v16 = vsel %vm2840_vm3, %v598_v8, %v602_v59  ;;  %v608_v53 = vrot.slane %v607_v60, 4  ;;  %v314_v31 = vrot.slane %v312_v2, 5  ;;  %v2636_v17 = vld [vmem:[%s3949_s1 + $0xa] sm:$0x3]  ;;  %v2692_v60 = vld [vmem:[%s3949_s1 + $0x10] sm:$0x3] }
  0x5b   : > { %v646_v63 = vunpack.c.l.b16 %v603_v16  ;;  %v309_v13 = vor.u32 %v308_v14, %v305_v20  ;;  %v318_v27 = vrot.slane %v316_v0, 4  ;;  %v324_v7 = vrot.slane %v322_v21, 5 }
  0x5c   : > { %4007 = vst [vmem:[#allocation15_spill] sm:$0xff] %v3122_v22  ;;  %2479 = vmatmul.msk.bf16.gmra.mxu2 %vm664_vm4, %v3122_v22  ;;  %v613_v59 = vsel %vm2840_vm3, %v608_v53, %v612_v6  ;;  %v2564_v5 = vrot.slane %v2850_v61, 9  ;;  %v1047_v0 = vrot.slane %v2857_v1, 5  ;;  %v1820_v21 = vsel %vm713_vm0, %v2653_v54, 0 }
  0x5d   : > { %v647_v8 = vunpack.c.l.b16 %v613_v59  ;;  %v310_v2 = vrot.slane %v309_v13, 4  ;;  %v319_v20 = vor.u32 %v318_v27, %v314_v31  ;;  %v1976_v16 = vsel %vm713_vm0, %v2674_v41, 0  ;;  %1829 = vmatpush.bf16.msra.mxu2 %v1820_v21  ;;  %v2713_v21 = vld [vmem:[%s2813_s27 + $0xc] sm:$0xff] }
  0x5e   : > { %v1686_v22 = vsel %vm713_vm0, %v2636_v17, 0  ;;  %v2116_v6 = vsel %vm713_vm0, %v2692_v60, 0  ;;  %v1048_v27 = vsel %vm3143_vm7, %v2564_v5, %v1047_v0  ;;  %1985 = vmatpush.bf16.msra.mxu3 %v1976_v16  ;;  %v1049_v54 = vrot.slane %v1047_v0, 4 }
  0x5f   : > { %v3152_v53 = vpack.c.b16 %v647_v8, %v646_v63  ;;  %v315_v61 = vsel %vm2840_vm3, %v310_v2, %v314_v31  ;;  %v320_v13 = vrot.slane %v319_v20, 4  ;;  %1695 = vmatpush.bf16.msra.mxu1 %v1686_v22  ;;  %2125 = vmatpush.bf16.msra.mxu0 %v2116_v6  ;;  %v2565_v41 = vrot.slane %v2924_v35, 9  ;;  %v2712_v22 = vld [vmem:[%s2813_s27] sm:$0xff]  ;;  %v3189_v6 = vld [vmem:[%s2813_s27 + $0x18] sm:$0xff] }
  0x60   : > { %v622_v1 = vunpack.c.l.b16 %v315_v61  ;;  %v1159_v31 = vunpack.c.l.b16 %v1048_v27  ;;  %v1054_v17 = vrot.slane %v2931_v43, 5  ;;  %v1057_v60 = vrot.slane %v2934_v48, 5 }
  0x61   : > { %2483 = vmatmul.msk.bf16.gmra.mxu3 %vm664_vm4, %v3152_v53  ;;  %v325_v63 = vsel %vm2840_vm3, %v320_v13, %v324_v7  ;;  %v1051_v5 = vsel %vm3143_vm7, %v1049_v54, %v1050_v55  ;;  %v1061_v16 = vrot.slane %v3019_v56, 5  ;;  %v2566_v61 = vrot.slane %v3014_v52, 9 }
  0x62   : > { %v623_v59 = vunpack.c.l.b16 %v325_v63  ;;  %v1160_v8 = vunpack.c.l.b16 %v1051_v5  ;;  %v1055_v35 = vsel %vm3143_vm7, %v2565_v41, %v1054_v17  ;;  %v1056_v2 = vrot.slane %v1054_v17, 4  ;;  %v3209_v41 = vld [vmem:[%s2813_s27 + $0x24] sm:$0xff] }
  0x63   : > { %v1161_v7 = vunpack.c.l.b16 %v1055_v35  ;;  %v1063_v13 = vrot.slane %v1061_v16, 4  ;;  %v1064_v27 = vrot.slane %v3022_v57, 5  ;;  %v1068_v57 = vrot.slane %v3107_v33, 5 }
  0x64   : > { %v3170_v20 = vpack.c.b16 %v623_v59, %v622_v1  ;;  %v1191_v0 = vpack.c.b16 %v1160_v8, %v1159_v31  ;;  %v1058_v43 = vsel %vm3143_vm7, %v1056_v2, %v1057_v60  ;;  %v2567_v63 = vrot.slane %v3100_v40, 9  ;;  %v3231_v8 = vld [vmem:[%s2813_s27 + $0x30] sm:$0xff] }
  0x65   : > { %v1162_v48 = vunpack.c.l.b16 %v1058_v43  ;;  %v1065_v56 = vsel %vm3143_vm7, %v1063_v13, %v1064_v27  ;;  %v1070_v31 = vrot.slane %v1068_v57, 4  ;;  %v1071_v17 = vrot.slane %v3111_v39, 5  ;;  %v3259_v27 = vld [vmem:[%s2813_s27 + $0x3c] sm:$0xff] }
  0x66   : > { %2471 = vmatmul.msk.bf16.gmra.mxu0 %vm664_vm4, %v3170_v20  ;;  %v1164_v54 = vunpack.c.l.b16 %v1065_v56  ;;  %v1069_v60 = vsel %vm3143_vm7, %v2567_v63, %v1068_v57  ;;  %v1075_v39 = vrot.slane %v2819_v11, 5  ;;  %v2568_v35 = vrot.slane %v2816_v10, 9 }
  0x67   : > { %2548 = vmatmul.msk.bf16.vlgmr.msrb.gmra.mxu1 %vm664_vm4, %v2712_v22  ;;  %v3177_v55 = vpack.c.b16 %v1162_v48, %v1161_v7  ;;  %v1072_v33 = vsel %vm3143_vm7, %v1070_v31, %v1071_v17  ;;  %v1165_v59 = vunpack.c.l.b16 %v1069_v60  ;;  %v1078_v7 = vrot.slane %v2822_v12, 5 }
  0x68   : > { %v1166_v5 = vunpack.c.l.b16 %v1072_v33  ;;  %v1077_v2 = vrot.slane %v1075_v39, 4  ;;  %v1082_v13 = vrot.slane %v2879_v24, 5  ;;  %v2569_v56 = vrot.slane %v2876_v23, 9 }
  0x6a   : > { %v3223_v40 = vpack.c.b16 %v1166_v5, %v1165_v59  ;;  %v1079_v11 = vsel %vm3143_vm7, %v1077_v2, %v1078_v7  ;;  %v1083_v24 = vsel %vm3143_vm7, %v2569_v56, %v1082_v13  ;;  %v1089_v5 = vrot.slane %v2949_v3, 5 }
  0x6b   : > { %v1169_v23 = vunpack.c.l.b16 %v1083_v24  ;;  %v2570_v7 = vrot.slane %v2944_v58, 9  ;;  %v1096_v24 = vrot.slane %v3039_v32, 5 }
  0x6c   : > { %2581 = vmatmul.msk.bf16.vlgmr.msrb.gmra.mxu2 %vm664_vm4, %v1191_v0  ;;  %v1076_v0 = vsel %vm3143_vm7, %v2568_v35, %v1075_v39  ;;  %v3293_v35 = vld [vmem:[%s2813_s27 + $0x48] sm:$0xff] }
  0x6d   : > { %v1167_v48 = vunpack.c.l.b16 %v1076_v0  ;;  %4012 = vst [vmem:[#allocation18_spill] sm:$0xff] %v3293_v35  ;;  %v1091_v0 = vrot.slane %v1089_v5, 4 }
  0x71   : > { %2602 = vmatmul.msk.bf16.vlgmr.msrb.gmra.mxu3 %vm664_vm4, %v2713_v21 }
  0x76   : > { %2619 = vmatmul.msk.bf16.vlgmr.msrb.gmra.mxu0 %vm664_vm4, %v2992_v9  ;;  %v1062_v9 = vsel %vm3143_vm7, %v2566_v61, %v1061_v16 }
  0x77   : > { %2549 = vmatmul.msk.bf16.gmra.mxu1 %vm664_vm4, %v2713_v21  ;;  %v1163_v1 = vunpack.c.l.b16 %v1062_v9  ;;  %v1168_v21 = vunpack.c.l.b16 %v1079_v11  ;;  %v1092_v11 = vrot.slane %v2956_v15, 5 }
  0x79   : > { %v3203_v52 = vpack.c.b16 %v1164_v54, %v1163_v1  ;;  %v3251_v12 = vpack.c.b16 %v1168_v21, %v1167_v48  ;;  %v1084_v1 = vrot.slane %v1082_v13, 4  ;;  %v1085_v54 = vrot.slane %v2884_v29, 5 }
  0x7a   : > { %v1090_v21 = vsel %vm3143_vm7, %v2570_v7, %v1089_v5  ;;  %v1093_v13 = vsel %vm3143_vm7, %v1091_v0, %v1092_v11  ;;  %v2571_v5 = vrot.slane %v3034_v26, 9  ;;  %v1098_v7 = vrot.slane %v1096_v24, 4 }
  0x7b   : > { %v1086_v63 = vsel %vm3143_vm7, %v1084_v1, %v1085_v54  ;;  %v1171_v56 = vunpack.c.l.b16 %v1090_v21  ;;  %v1172_v1 = vunpack.c.l.b16 %v1093_v13  ;;  %v1099_v0 = vrot.slane %v3044_v46, 5 }
  0x7c   : > { %2582 = vmatmul.msk.bf16.gmra.mxu2 %vm664_vm4, %v3177_v55  ;;  %v1170_v60 = vunpack.c.l.b16 %v1086_v63  ;;  %v1097_v32 = vsel %vm3143_vm7, %v2571_v5, %v1096_v24  ;;  %v1103_v5 = vrot.slane %v2831_v19, 5 }
  0x7d   : > { %v3317_v54 = vpack.c.b16 %v1172_v1, %v1171_v56  ;;  %v1100_v13 = vsel %vm3143_vm7, %v1098_v7, %v1099_v0  ;;  %v1173_v56 = vunpack.c.l.b16 %v1097_v32  ;;  %v2743_v32 = vld [vmem:[%s2813_s27 + $0x68] sm:$0x1] }
  0x7e   : > { %v3283_v33 = vpack.c.b16 %v1170_v60, %v1169_v23  ;;  %v3327_v60 = vld [vmem:[%s2813_s27 + $0x54] sm:$0xff]  ;;  %v1174_v46 = vunpack.c.l.b16 %v1100_v13  ;;  %v1106_v13 = vrot.slane %v2743_v32, 5 }
  0x7f   : > { %4015 = vst [vmem:[#allocation21_spill] sm:$0xff] %v3317_v54 }
  0x80   : > { %4016 = vst [vmem:[#allocation22_spill] sm:$0xff] %v3327_v60 }
  0x81   : > { %2603 = vmatmul.msk.bf16.gmra.mxu3 %vm664_vm4, %v3189_v6 }
  0x86   : > { %2620 = vmatmul.msk.bf16.gmra.mxu0 %vm664_vm4, %v3080_v45 }
  0x87   : > { %2550 = vmatmul.msk.bf16.gmra.mxu1 %vm664_vm4, %v3189_v6 }
  0x8c   : > { %2583 = vmatmul.msk.bf16.gmra.mxu2 %vm664_vm4, %v3203_v52 }
  0x91   : > { %2604 = vmatmul.msk.bf16.gmra.mxu3 %vm664_vm4, %v3209_v41 }
  0x96   : > { %2621 = vmatmul.msk.bf16.gmra.mxu0 %vm664_vm4, %v3170_v20 }
  0x97   : > { %2551 = vmatmul.msk.bf16.gmra.mxu1 %vm664_vm4, %v3209_v41 }
  0x9c   : > { %v3226_v22 = vpop.f32.mrf.mxu1  ;;  %2584 = vmatmul.msk.bf16.gmra.mxu2 %vm664_vm4, %v3223_v40 }
  0xa1   : > { %2605 = vmatmul.msk.bf16.gmra.mxu3 %vm664_vm4, %v3231_v8 }
  0xa4   : > { %v3241_v43 = vpop.f32.mrf.mxu1 }
  0xa6   : > { %v3243_v16 = vpop.f32.mrf.mxu2  ;;  %2622 = vmatmul.msk.bf16.gmra.mxu0 %vm664_vm4, %v2852_v62 }
  0xa7   : > { %2552 = vmatmul.msk.bf16.gmra.mxu1 %vm664_vm4, %v3231_v8 }
  0xa9   : > { %v3249_v10 = vpop.f32.mrf.mxu0 }
  0xaa   : > { %v3253_v61 = vpop.f32.mrf.mxu3 }
  0xab   : > { %4010 = vst [vmem:[#allocation16_spill] sm:$0xff] %v3253_v61 }
  0xac   : > { %2585 = vmatmul.msk.bf16.gmra.mxu2 %vm664_vm4, %v3251_v12 }
  0xae   : > { %v3261_v9 = vpop.f32.mrf.mxu1  ;;  %v3265_v57 = vpop.f32.mrf.mxu2 }
  0xb1   : > { %2606 = vmatmul.msk.bf16.gmra.mxu3 %vm664_vm4, %v3259_v27  ;;  %v3273_v31 = vpop.f32.mrf.mxu0 }
  0xb2   : > { %v3275_v17 = vpop.f32.mrf.mxu3 }
  0xb3   : > { %4011 = vst [vmem:[#allocation17_spill] sm:$0xff] %v3275_v17 }
  0xb6   : > { %2623 = vmatmul.msk.bf16.gmra.mxu0 %vm664_vm4, %v2926_v37  ;;  %v3279_v29 = vpop.f32.mrf.mxu1 }
  0xb7   : > { %2553 = vmatmul.msk.bf16.gmra.mxu1 %vm664_vm4, %v3259_v27 }
  0xb9   : > { %v3285_v59 = vpop.f32.mrf.mxu2 }
  0xbc   : > { %2586 = vmatmul.msk.bf16.gmra.mxu2 %vm664_vm4, %v3283_v33 }
  0xbd   : > { %v3288_v39 = vpop.f32.mrf.mxu0 }
  0xbe   : > { %v3295_v2 = vpop.f32.mrf.mxu3 }
  0xbf   : > { %4013 = vst [vmem:[#allocation19_spill] sm:$0xff] %v3295_v2 }
  0xc0   : > { %v3299_v48 = vpop.f32.mrf.mxu1 }
  0xc1   : > { %2607 = vmatmul.msk.bf16.gmra.mxu3 %vm664_vm4, %v3293_v35  ;;  %v3303_v3 = vpop.f32.mrf.mxu2 }
  0xc5   : > { %v3309_v58 = vpop.f32.mrf.mxu0 }
  0xc6   : > { %2624 = vmatmul.msk.bf16.gmra.mxu0 %vm664_vm4, %v3011_v44  ;;  %v3313_v15 = vpop.f32.mrf.mxu3 }
  0xc7   : > { %4014 = vst [vmem:[#allocation20_spill] sm:$0xff] %v3313_v15  ;;  %2554 = vmatmul.msk.bf16.gmra.mxu1 %vm664_vm4, %v3293_v35  ;;  %v3362_v15 = vld [vmem:[%s2813_s27 + $0x60] sm:$0xff] }
  0xc8   : > { %v3320_v63 = vpop.f32.mrf.mxu1  ;;  %4020 = vst [vmem:[#allocation26_spill] sm:$0xff] %v3362_v15 }
  0xcc   : > { %v3322_v23 = vpop.f32.mrf.mxu2  ;;  %2587 = vmatmul.msk.bf16.gmra.mxu2 %vm664_vm4, %v3317_v54 }
  0xcf   : > { %v3331_v11 = vpop.f32.mrf.mxu0 }
  0xd0   : > { %v3333_v21 = vpop.f32.mrf.mxu3 }
  0xd1   : > { %4017 = vst [vmem:[#allocation23_spill] sm:$0xff] %v3333_v21  ;;  %2608 = vmatmul.msk.bf16.gmra.mxu3 %vm664_vm4, %v3327_v60  ;;  %v3349_v21 = vpack.c.b16 %v1174_v46, %v1173_v56 }
  0xd3   : > { %4018 = vst [vmem:[#allocation24_spill] sm:$0xff] %v3349_v21 }
  0xd4   : > { %v3341_v26 = vpop.f32.mrf.mxu1  ;;  %v3343_v1 = vpop.f32.mrf.mxu2 }
  0xd6   : > { %2625 = vmatmul.msk.bf16.gmra.mxu0 %vm664_vm4, %v3102_v42  ;;  %v2744_v42 = vld [vmem:[%s2813_s27 + $0x60] sm:$0xf] }
  0xd7   : > { %2555 = vmatmul.msk.bf16.gmra.mxu1 %vm664_vm4, %v3327_v60  ;;  %v3351_v24 = vpop.f32.mrf.mxu0  ;;  %v2572_v2 = vrot.slane %v2744_v42, 9  ;;  %v1105_v60 = vrot.slane %v1103_v5, 4 }
  0xd8   : > { %v3354_v7 = vpop.f32.mrf.mxu3 }
  0xd9   : > { %4019 = vst [vmem:[#allocation25_spill] sm:$0xff] %v3354_v7  ;;  %v1104_v19 = vsel %vm3143_vm7, %v2572_v2, %v1103_v5  ;;  %v1107_v46 = vsel %vm3143_vm7, %v1105_v60, %v1106_v13  ;;  %v1110_v60 = vrot.slane %v2899_v47, 5 }
  0xda   : > { %v1175_v17 = vunpack.c.l.b16 %v1104_v19  ;;  %v1176_v42 = vunpack.c.l.b16 %v1107_v46  ;;  %v3395_v19 = vld [vmem:[%s2813_s27 + $0x6c] sm:$0xff] }
  0xdc   : > { %2588 = vmatmul.msk.bf16.gmra.mxu2 %vm664_vm4, %v3349_v21  ;;  %v3358_v0 = vpop.f32.mrf.mxu1  ;;  %v3384_v2 = vpack.c.b16 %v1176_v42, %v1175_v17  ;;  %v1112_v17 = vrot.slane %v1110_v60, 4 }
  0xde   : > { %4022 = vst [vmem:[#allocation28_spill] sm:$0xff] %v3384_v2 }
  0xdf   : > { %v3365_v56 = vpop.f32.mrf.mxu2 }
  0xe1   : > { %2609 = vmatmul.msk.bf16.gmra.mxu3 %vm664_vm4, %v3362_v15 }
  0xe3   : > { %v3373_v7 = vpop.f32.mrf.mxu0 }
  0xe4   : > { %v3375_v32 = vpop.f32.mrf.mxu3  ;;  %v946_v21 = vpop.f32.mrf.mxu1 }
  0xe5   : > { %4021 = vst [vmem:[#allocation27_spill] sm:$0xff] %v3375_v32  ;;  %v947_v54 = vadd.f32 %v946_v21, %v3249_v10  ;;  %v1113_v21 = vrot.slane %v2906_v51, 5  ;;  %v2573_v32 = vrot.slane %v2892_v38, 9 }
  0xe6   : > { %2626 = vmatmul.msk.bf16.gmra.mxu0 %vm664_vm4, %v2871_v18 }
  0xe7   : > { %v3380_v44 = vpop.f32.mrf.mxu2  ;;  %2556 = vmatmul.msk.bf16.gmra.mxu1 %vm664_vm4, %v3362_v15  ;;  %v1111_v47 = vsel %vm3143_vm7, %v2573_v32, %v1110_v60 }
  0xe8   : > { %v1177_v61 = vunpack.c.l.b16 %v1111_v47 }
  0xeb   : > { %v3387_v5 = vpop.f32.mrf.mxu0 }
  0xec   : > { %v3389_v13 = vpop.f32.mrf.mxu3  ;;  %2589 = vmatmul.msk.bf16.gmra.mxu2 %vm664_vm4, %v3384_v2  ;;  %v948_v10 = vpop.f32.mrf.mxu1 }
  0xed   : > { %4023 = vst [vmem:[#allocation29_spill] sm:$0xff] %v3389_v13  ;;  %v949_v46 = vadd.f32 %v948_v10, %v3273_v31  ;;  %v1114_v13 = vsel %vm3143_vm7, %v1112_v17, %v1113_v21  ;;  %v1117_v21 = vrot.slane %v2971_v34, 5 }
  0xee   : > { %v1178_v35 = vunpack.c.l.b16 %v1114_v13  ;;  %v1120_v13 = vrot.slane %v2978_v50, 5 }
  0xef   : > { %v1267_v42 = vpop.f32.mrf.mxu2 }
  0xf0   : > { %v1347_v18 = vadd.f32 %v1267_v42, %v947_v54  ;;  %v3412_v10 = vpack.c.b16 %v1178_v35, %v1177_v61  ;;  %v3419_v42 = vld [vmem:[%s2813_s27 + $0x78] sm:$0xff] }
  0xf1   : > { %2610 = vmatmul.msk.bf16.gmra.mxu3 %vm664_vm4, %v3395_v19 }
  0xf3   : > { %v1557_v2 = vpop.f32.mrf.mxu0 }
  0xf4   : > { %v1401_v51 = vpop.f32.mrf.mxu3  ;;  %v951_v15 = vpop.f32.mrf.mxu1 }
  0xf5   : > { %v1481_v31 = vadd.f32 %v1401_v51, %v1347_v18  ;;  %v952_v38 = vadd.f32 %v951_v15, %v3288_v39 }
  0xf6   : > { %2627 = vmatmul.msk.bf16.gmra.mxu0 %vm664_vm4, %v2951_v4 }
  0xf7   : > { %v1269_v54 = vpop.f32.mrf.mxu2  ;;  %2557 = vmatmul.msk.bf16.gmra.mxu1 %vm664_vm4, %v3395_v19  ;;  %v3410_v32 = vadd.f32 %v1557_v2, %v1481_v31  ;;  %v2574_v2 = vrot.slane %v2967_v28, 9 }
  0xf8   : > { %v1348_v60 = vadd.f32 %v1269_v54, %v949_v46  ;;  %v1119_v46 = vrot.slane %v1117_v21, 4 }
  0xf9   : > { %v1118_v50 = vsel %vm3143_vm7, %v2574_v2, %v1117_v21 }
  0xfa   : > { %v1121_v51 = vsel %vm3143_vm7, %v1119_v46, %v1120_v13  ;;  %v1127_v46 = vrot.slane %v3066_v49, 5 }
  0xfb   : > { %v1559_v17 = vpop.f32.mrf.mxu0 }
  0xfc   : > { %v1403_v18 = vpop.f32.mrf.mxu3  ;;  %2590 = vmatmul.msk.bf16.gmra.mxu2 %vm664_vm4, %v3412_v10  ;;  %v953_v39 = vpop.f32.mrf.mxu1 }
  0xfd   : > { %v1482_v15 = vadd.f32 %v1403_v18, %v1348_v60  ;;  %v954_v47 = vadd.f32 %v953_v39, %v3309_v58  ;;  %v1179_v58 = vunpack.c.l.b16 %v1118_v50  ;;  %v1180_v18 = vunpack.c.l.b16 %v1121_v51  ;;  %v3445_v50 = vld [vmem:[%s2813_s27 + $0x84] sm:$0xff] }
  0xff   : > { %v1272_v61 = vpop.f32.mrf.mxu2  ;;  %v3423_v35 = vadd.f32 %v1559_v17, %v1482_v15  ;;  %v3438_v13 = vpack.c.b16 %v1180_v18, %v1179_v58  ;;  %v1124_v15 = vrot.slane %v3061_v30, 5 }
 0x100   : > { %v1349_v34 = vadd.f32 %v1272_v61, %v952_v38 }
 0x101   : > { %2611 = vmatmul.msk.bf16.gmra.mxu3 %vm664_vm4, %v3419_v42 }
 0x103   : > { %v1562_v31 = vpop.f32.mrf.mxu0 }
 0x104   : > { %v1406_v54 = vpop.f32.mrf.mxu3  ;;  %v956_v60 = vpop.f32.mrf.mxu1 }
 0x105   : > { %v1483_v28 = vadd.f32 %v1406_v54, %v1349_v34  ;;  %v957_v17 = vadd.f32 %v956_v60, %v3331_v11 }
 0x106   : > { %2628 = vmatmul.msk.bf16.gmra.mxu0 %vm664_vm4, %v3036_v25 }
 0x107   : > { %v1274_v38 = vpop.f32.mrf.mxu2  ;;  %2558 = vmatmul.msk.bf16.gmra.mxu1 %vm664_vm4, %v3419_v42  ;;  %v3436_v21 = vadd.f32 %v1562_v31, %v1483_v28  ;;  %v4024_v31 = vld [vmem:[#allocation9_spill] sm:$0xff] }
 0x108   : > { %v1350_v39 = vadd.f32 %v1274_v38, %v954_v47  ;;  %v2575_v54 = vrot.slane %v4024_v31, 9  ;;  %v1126_v47 = vrot.slane %v1124_v15, 4 }
 0x10a   : > { %v1125_v49 = vsel %vm3143_vm7, %v2575_v54, %v1124_v15  ;;  %v1128_v18 = vsel %vm3143_vm7, %v1126_v47, %v1127_v46  ;;  %v2745_v54 = vld [vmem:[%s2813_s27 + $0x94] sm:$0xf] }
 0x10b   : > { %v1564_v2 = vpop.f32.mrf.mxu0  ;;  %v1131_v47 = vrot.slane %v2745_v54, 5 }
 0x10c   : > { %v1408_v61 = vpop.f32.mrf.mxu3  ;;  %2591 = vmatmul.msk.bf16.gmra.mxu2 %vm664_vm4, %v3438_v13  ;;  %v958_v11 = vpop.f32.mrf.mxu1 }
 0x10d   : > { %v1484_v34 = vadd.f32 %v1408_v61, %v1350_v39  ;;  %v959_v51 = vadd.f32 %v958_v11, %v3351_v24  ;;  %v1181_v39 = vunpack.c.l.b16 %v1125_v49  ;;  %v1182_v61 = vunpack.c.l.b16 %v1128_v18 }
 0x10f   : > { %v1277_v60 = vpop.f32.mrf.mxu2  ;;  %v3449_v58 = vadd.f32 %v1564_v2, %v1484_v34  ;;  %v3464_v31 = vpack.c.b16 %v1182_v61, %v1181_v39 }
 0x110   : > { %v1351_v30 = vadd.f32 %v1277_v60, %v957_v17  ;;  %v4026_v17 = vld [vmem:[#allocation15_spill] sm:$0xff] }
 0x111   : > { %4025 = vst [vmem:[#allocation9_spill] sm:$0xff] %v3449_v58  ;;  %2612 = vmatmul.msk.bf16.gmra.mxu3 %vm664_vm4, %v3445_v50 }
 0x112   : > { %4028 = vst [vmem:[#allocation31_spill] sm:$0xff] %v3464_v31 }
 0x113   : > { %v1567_v28 = vpop.f32.mrf.mxu0 }
 0x114   : > { %v1411_v24 = vpop.f32.mrf.mxu3  ;;  %v961_v38 = vpop.f32.mrf.mxu1 }
 0x115   : > { %v1485_v11 = vadd.f32 %v1411_v24, %v1351_v30  ;;  %v962_v2 = vadd.f32 %v961_v38, %v3373_v7  ;;  %v2746_v30 = vld [vmem:[%s2813_s27 + $0x98] sm:$0x1]  ;;  %v3471_v38 = vld [vmem:[%s2813_s27 + $0x90] sm:$0xff] }
 0x116   : > { %2629 = vmatmul.msk.bf16.gmra.mxu0 %vm664_vm4, %v4026_v17  ;;  %v1134_v49 = vrot.slane %v2746_v30, 5  ;;  %4029 = vst [vmem:[#allocation32_spill] sm:$0xff] %v3471_v38 }
 0x117   : > { %v1279_v34 = vpop.f32.mrf.mxu2  ;;  %2559 = vmatmul.msk.bf16.gmra.mxu1 %vm664_vm4, %v3445_v50  ;;  %v3462_v15 = vadd.f32 %v1567_v28, %v1485_v11  ;;  %v2747_v28 = vld [vmem:[%s2813_s27 + $0x90] sm:$0xf] }
 0x118   : > { %v1352_v46 = vadd.f32 %v1279_v34, %v959_v51  ;;  %v2576_v11 = vrot.slane %v2747_v28, 9  ;;  %v1133_v51 = vrot.slane %v1131_v47, 4 }
 0x119   : > { %4027 = vst [vmem:[#allocation30_spill] sm:$0xff] %v3462_v15 }
 0x11a   : > { %v1132_v54 = vsel %vm3143_vm7, %v2576_v11, %v1131_v47  ;;  %v2748_v11 = vld [vmem:[%s2813_s27 + $0xa0] sm:$0xf] }
 0x11b   : > { %v1569_v60 = vpop.f32.mrf.mxu0 }
 0x11c   : > { %v1413_v7 = vpop.f32.mrf.mxu3  ;;  %2592 = vmatmul.msk.bf16.gmra.mxu2 %vm664_vm4, %v3464_v31  ;;  %v963_v18 = vpop.f32.mrf.mxu1  ;;  %v2750_v31 = vld [vmem:[%s2813_s27 + $0x9c] sm:$0xf] }
 0x11d   : > { %v1486_v24 = vadd.f32 %v1413_v7, %v1352_v46  ;;  %v964_v58 = vadd.f32 %v963_v18, %v3387_v5  ;;  %v1135_v46 = vsel %vm3143_vm7, %v1133_v51, %v1134_v49  ;;  %v1183_v18 = vunpack.c.l.b16 %v1132_v54 }
 0x11e   : > { %v1184_v28 = vunpack.c.l.b16 %v1135_v46  ;;  %v1138_v51 = vrot.slane %v2748_v11, 5  ;;  %v2749_v46 = vld [vmem:[%s2813_s27 + $0xa4] sm:$0x1] }
 0x11f   : > { %v1282_v39 = vpop.f32.mrf.mxu2  ;;  %v3475_v61 = vadd.f32 %v1569_v60, %v1486_v24  ;;  %v4031_v60 = vld [vmem:[#allocation3_spill] sm:$0xff] }
 0x120   : > { %v1353_v34 = vadd.f32 %v1282_v39, %v962_v2  ;;  %v3489_v49 = vpack.c.b16 %v1184_v28, %v1183_v18 }
 0x121   : > { %4030 = vst [vmem:[#allocation33_spill] sm:$0xff] %v3475_v61  ;;  %2613 = vmatmul.msk.bf16.gmra.mxu3 %vm664_vm4, %v3471_v38 }
 0x122   : > { %4033 = vst [vmem:[#allocation35_spill] sm:$0xff] %v3489_v49 }
 0x123   : > { %v1572_v30 = vpop.f32.mrf.mxu0 }
 0x124   : > { %v1416_v7 = vpop.f32.mrf.mxu3  ;;  %v966_v5 = vpop.f32.mrf.mxu1 }
 0x125   : > { %v1487_v15 = vadd.f32 %v1416_v7, %v1353_v34  ;;  %v1141_v7 = vrot.slane %v2749_v46, 5 }
 0x126   : > { %2630 = vmatmul.msk.bf16.gmra.mxu0 %vm664_vm4, %v4031_v60  ;;  %v3496_v60 = vld [vmem:[%s2813_s27 + $0x9c] sm:$0xff] }
 0x127   : > { %v1284_v2 = vpop.f32.mrf.mxu2  ;;  %2560 = vmatmul.msk.bf16.gmra.mxu1 %vm664_vm4, %v3471_v38  ;;  %v3487_v47 = vadd.f32 %v1572_v30, %v1487_v15  ;;  %4034 = vst [vmem:[#allocation36_spill] sm:$0xff] %v3496_v60  ;;  %v2577_v38 = vrot.slane %v2750_v31, 9  ;;  %v1140_v15 = vrot.slane %v1138_v51, 4 }
 0x128   : > { %v1354_v24 = vadd.f32 %v1284_v2, %v964_v58  ;;  %v967_v58 = vadd.f32 %v966_v5, %v3226_v22  ;;  %v4036_v5 = vld [vmem:[#allocation4_spill] sm:$0xff] }
 0x129   : > { %4032 = vst [vmem:[#allocation34_spill] sm:$0xff] %v3487_v47  ;;  %v1139_v2 = vsel %vm3143_vm7, %v2577_v38, %v1138_v51 }
 0x12a   : > { %v1185_v31 = vunpack.c.l.b16 %v1139_v2 }
 0x12b   : > { %v1574_v39 = vpop.f32.mrf.mxu0 }
 0x12c   : > { %v1418_v54 = vpop.f32.mrf.mxu3  ;;  %2593 = vmatmul.msk.bf16.gmra.mxu2 %vm664_vm4, %v3489_v49  ;;  %v968_v34 = vpop.f32.mrf.mxu1 }
 0x12d   : > { %v1488_v61 = vadd.f32 %v1418_v54, %v1354_v24  ;;  %v1142_v24 = vsel %vm3143_vm7, %v1140_v15, %v1141_v7  ;;  %v4039_v15 = vld [vmem:[#allocation6_spill] sm:$0xff] }
 0x12e   : > { %v1186_v47 = vunpack.c.l.b16 %v1142_v24  ;;  %v4040_v24 = vld [vmem:[#allocation7_spill] sm:$0xff] }
 0x12f   : > { %v1287_v30 = vpop.f32.mrf.mxu2  ;;  %v3500_v18 = vadd.f32 %v1574_v39, %v1488_v61  ;;  %v969_v61 = vadd.f32 %v968_v34, %v3241_v43  ;;  %v3522_v34 = vld [vmem:[%s2813_s27 + $0xa8] sm:$0xff] }
 0x130   : > { %v1355_v28 = vadd.f32 %v1287_v30, %v967_v58  ;;  %v3515_v7 = vpack.c.b16 %v1186_v47, %v1185_v31  ;;  %v1145_v58 = vrot.slane %v4039_v15, 5  ;;  %4041 = vst [vmem:[#allocation6_spill] sm:$0xff] %v3522_v34 }
 0x131   : > { %4035 = vst [vmem:[#allocation37_spill] sm:$0xff] %v3500_v18  ;;  %2614 = vmatmul.msk.bf16.gmra.mxu3 %vm664_vm4, %v3496_v60  ;;  %v4042_v18 = vld [vmem:[#allocation5_spill] sm:$0xff] }
 0x132   : > { %4038 = vst [vmem:[#allocation39_spill] sm:$0xff] %v3515_v7 }
 0x133   : > { %v1577_v11 = vpop.f32.mrf.mxu0 }
 0x134   : > { %v1421_v54 = vpop.f32.mrf.mxu3  ;;  %v971_v46 = vpop.f32.mrf.mxu1 }
 0x135   : > { %v1489_v22 = vadd.f32 %v1421_v54, %v1355_v28  ;;  %v1148_v54 = vrot.slane %v4040_v24, 5 }
 0x136   : > { %2631 = vmatmul.msk.bf16.gmra.mxu0 %vm664_vm4, %v4036_v5  ;;  %v2578_v5 = vrot.slane %v4042_v18, 9 }
 0x137   : > { %v1289_v39 = vpop.f32.mrf.mxu2  ;;  %2561 = vmatmul.msk.bf16.gmra.mxu1 %vm664_vm4, %v3496_v60  ;;  %v3513_v38 = vadd.f32 %v1577_v11, %v1489_v22  ;;  %v1147_v11 = vrot.slane %v1145_v58, 4  ;;  %v972_v22 = vadd.f32 %v971_v46, %v3261_v9 }
 0x138   : > { %v1356_v51 = vadd.f32 %v1289_v39, %v969_v61  ;;  %v1146_v39 = vsel %vm3143_vm7, %v2578_v5, %v1145_v58  ;;  %v3540_v5 = vld [vmem:[%s2813_s27 + $0xc0] sm:$0xf] }
 0x139   : > { %4037 = vst [vmem:[#allocation38_spill] sm:$0xff] %v3513_v38  ;;  %v1187_v24 = vunpack.c.l.b16 %v1146_v39  ;;  %v4044_v38 = vld [vmem:[#allocation10_spill] sm:$0xff]  ;;  %v1514_v39 = vshrl.u32 %v3540_v5, 16 }
 0x13a   : > { %4045 = vst [vmem:[#allocation5_spill] sm:$0xff] %v3540_v5 }
 0x13b   : > { %v1579_v30 = vpop.f32.mrf.mxu0 }
 0x13c   : > { %v1423_v2 = vpop.f32.mrf.mxu3  ;;  %2594 = vmatmul.msk.bf16.gmra.mxu2 %vm664_vm4, %v3515_v7  ;;  %v973_v28 = vpop.f32.mrf.mxu1 }
 0x13d   : > { %v1490_v43 = vadd.f32 %v1423_v2, %v1356_v51  ;;  %v1149_v51 = vsel %vm3143_vm7, %v1147_v11, %v1148_v54 }
 0x13e   : > { %v1188_v9 = vunpack.c.l.b16 %v1149_v51 }
 0x13f   : > { %v1292_v47 = vpop.f32.mrf.mxu2  ;;  %v3526_v31 = vadd.f32 %v1579_v30, %v1490_v43  ;;  %v974_v30 = vadd.f32 %v973_v28, %v3279_v29  ;;  %v1517_v29 = vshll.u32 %v3540_v5, 16 }
 0x140   : > { %v1357_v61 = vadd.f32 %v1292_v47, %v972_v22  ;;  %v3544_v11 = vpack.c.b16 %v1188_v9, %v1187_v24  ;;  %v3547_v22 = vld [vmem:[%s2813_s27 + $0xc4] sm:$0xf]  ;;  %v4049_v47 = vld [vmem:[#allocation12_spill] sm:$0xff]  ;;  %v4050_v24 = vld [vmem:[#allocation13_spill] sm:$0xff] }
 0x141   : > { %4043 = vst [vmem:[#allocation7_spill] sm:$0xff] %v3526_v31  ;;  %2615 = vmatmul.msk.bf16.gmra.mxu3 %vm664_vm4, %v3522_v34  ;;  %v1523_v28 = vshll.u32 %v3547_v22, 16  ;;  %v1155_v9 = vrot.slane %v4050_v24, 5  ;;  %v1519_v7 = vrot.slane %v1517_v29, 5 }
 0x142   : > { %4047 = vst [vmem:[#allocation41_spill] sm:$0xff] %v3544_v11 }
 0x143   : > { %v1582_v15 = vpop.f32.mrf.mxu0  ;;  %4048 = vst [vmem:[#allocation42_spill] sm:$0xff] %v3547_v22 }
 0x144   : > { %v1426_v18 = vpop.f32.mrf.mxu3  ;;  %v976_v2 = vpop.f32.mrf.mxu1 }
 0x145   : > { %v1491_v46 = vadd.f32 %v1426_v18, %v1357_v61  ;;  %v1152_v61 = vrot.slane %v4049_v47, 5  ;;  %v1527_v18 = vshrl.u32 %v3547_v22, 16  ;;  %v977_v5 = vadd.f32 %v976_v2, %v3299_v48 }
 0x146   : > { %2632 = vmatmul.msk.bf16.gmra.mxu0 %vm664_vm4, %v4044_v38  ;;  %v1516_v38 = vrot.slane %v1514_v39, 4  ;;  %v1525_v22 = vrot.slane %v1523_v28, 5 }
 0x147   : > { %v1294_v43 = vpop.f32.mrf.mxu2  ;;  %2562 = vmatmul.msk.bf16.gmra.mxu1 %vm664_vm4, %v3522_v34  ;;  %v3542_v58 = vadd.f32 %v1582_v15, %v1491_v46  ;;  %v1529_v60 = vrot.slane %v1527_v18, 4 }
 0x148   : > { %v1358_v54 = vadd.f32 %v1294_v43, %v974_v30  ;;  %v3558_v30 = vld [vmem:[%s2813_s27 + $0xb4] sm:$0xff]  ;;  %v4051_v43 = vld [vmem:[#allocation11_spill] sm:$0xff]  ;;  %v1520_v2 = vor.u32 %v1519_v7, %v1516_v38 }
 0x149   : > { %4046 = vst [vmem:[#allocation40_spill] sm:$0xff] %v3542_v58  ;;  %v2579_v47 = vrot.slane %v4051_v43, 9  ;;  %v1154_v58 = vrot.slane %v1152_v61, 4  ;;  %v1530_v39 = vor.u32 %v1529_v60, %v1525_v22 }
 0x14b   : > { %v1584_v51 = vpop.f32.mrf.mxu0  ;;  %v1531_v38 = vrot.slane %v1530_v39, 4 }
 0x14c   : > { %v1428_v31 = vpop.f32.mrf.mxu3  ;;  %2595 = vmatmul.msk.bf16.gmra.mxu2 %vm664_vm4, %v3544_v11  ;;  %v978_v15 = vpop.f32.mrf.mxu1  ;;  %v3565_v11 = vld [vmem:[%s2813_s27 + $0xc8] sm:$0x1] }
 0x14d   : > { %v1492_v46 = vadd.f32 %v1428_v31, %v1358_v54  ;;  %v1153_v31 = vsel %vm3143_vm7, %v2579_v47, %v1152_v61  ;;  %v1156_v54 = vsel %vm3143_vm7, %v1154_v58, %v1155_v9  ;;  %v1533_v29 = vshll.u32 %v3565_v11, 16 }
 0x14e   : > { %v1189_v18 = vunpack.c.l.b16 %v1153_v31  ;;  %v979_v24 = vadd.f32 %v978_v15, %v3320_v63  ;;  %v1521_v58 = vrot.slane %v1520_v2, 4 }
 0x14f   : > { %v1297_v34 = vpop.f32.mrf.mxu2  ;;  %v3562_v49 = vadd.f32 %v1584_v51, %v1492_v46  ;;  %v1535_v60 = vrot.slane %v1533_v29, 5 }
 0x150   : > { %v1359_v17 = vadd.f32 %v1297_v34, %v977_v5  ;;  %v1190_v34 = vunpack.c.l.b16 %v1156_v54  ;;  %v3590_v54 = vld [vmem:[%s2813_s27 + $0xc0] sm:$0xff] }
 0x151   : > { %2616 = vmatmul.msk.bf16.gmra.mxu3 %vm664_vm4, %v3558_v30  ;;  %v1536_v63 = vsel %vm2840_vm3, %v1531_v38, %v1535_v60 }
 0x152   : > { %v3581_v46 = vpack.c.b16 %v1190_v34, %v1189_v18  ;;  %v1540_v39 = vunpack.c.l.b16 %v1536_v63 }
 0x153   : > { %v1587_v48 = vpop.f32.mrf.mxu0 }
 0x154   : > { %v1431_v28 = vpop.f32.mrf.mxu3  ;;  %v981_v51 = vpop.f32.mrf.mxu1 }
 0x155   : > { %v1493_v5 = vadd.f32 %v1431_v28, %v1359_v17  ;;  %v1526_v17 = vsel %vm2840_vm3, %v1521_v58, %v1525_v22 }
 0x156   : > { %2633 = vmatmul.msk.bf16.gmra.mxu0 %vm664_vm4, %v3152_v53  ;;  %v1539_v2 = vunpack.c.l.b16 %v1526_v17 }
 0x157   : > { %v1299_v61 = vpop.f32.mrf.mxu2  ;;  %2563 = vmatmul.msk.bf16.gmra.mxu1 %vm664_vm4, %v3558_v30  ;;  %v3579_v7 = vadd.f32 %v1587_v48, %v1493_v5  ;;  %v982_v48 = vadd.f32 %v981_v51, %v3341_v26 }
 0x158   : > { %v1360_v9 = vadd.f32 %v1299_v61, %v979_v24  ;;  %v3597_v22 = vpack.c.b16 %v1540_v39, %v1539_v2 }
 0x15b   : > { %v1589_v43 = vpop.f32.mrf.mxu0 }
 0x15c   : > { %v1433_v15 = vpop.f32.mrf.mxu3  ;;  %2596 = vmatmul.msk.bf16.gmra.mxu2 %vm664_vm4, %v3581_v46  ;;  %v983_v47 = vpop.f32.mrf.mxu1 }
 0x15d   : > { %v1494_v31 = vadd.f32 %v1433_v15, %v1360_v9  ;;  %v984_v26 = vadd.f32 %v983_v47, %v3358_v0 }
 0x15f   : > { %v1302_v29 = vpop.f32.mrf.mxu2  ;;  %v3593_v28 = vadd.f32 %v1589_v43, %v1494_v31 }
 0x160   : > { %v1361_v18 = vadd.f32 %v1302_v29, %v982_v48 }
 0x161   : > { %2617 = vmatmul.msk.bf16.gmra.mxu3 %vm664_vm4, %v3590_v54 }
 0x163   : > { %v1592_v34 = vpop.f32.mrf.mxu0 }
 0x164   : > { %v1436_v5 = vpop.f32.mrf.mxu3  ;;  %v986_v24 = vpop.f32.mrf.mxu1 }
 0x165   : > { %v1495_v61 = vadd.f32 %v1436_v5, %v1361_v18  ;;  %v987_v63 = vadd.f32 %v986_v24, %v3243_v16 }
 0x166   : > { %2634 = vmatmul.msk.bf16.gmra.mxu0 %vm664_vm4, %v3597_v22 }
 0x167   : > { %v1304_v51 = vpop.f32.mrf.mxu2  ;;  %2637 = vmatmul.msk.bf16.vlgmr.msra.gmra.mxu1 %vm664_vm4, %v3177_v55  ;;  %v3604_v58 = vadd.f32 %v1592_v34, %v1495_v61 }
 0x168   : > { %v1362_v38 = vadd.f32 %v1304_v51, %v984_v26 }
 0x16b   : > { %v1594_v60 = vpop.f32.mrf.mxu0 }
 0x16c   : > { %v1438_v9 = vpop.f32.mrf.mxu3  ;;  %2658 = vmatmul.msk.bf16.vlgmr.msra.gmra.mxu2 %vm664_vm4, %v3189_v6  ;;  %v988_v43 = vpop.f32.mrf.mxu1 }
 0x16d   : > { %v1496_v17 = vadd.f32 %v1438_v9, %v1362_v38  ;;  %v989_v6 = vadd.f32 %v988_v43, %v3265_v57 }
 0x16f   : > { %v1307_v15 = vpop.f32.mrf.mxu2  ;;  %v3609_v31 = vadd.f32 %v1594_v60, %v1496_v17 }
 0x170   : > { %v1363_v0 = vadd.f32 %v1307_v15, %v987_v63 }
 0x171   : > { %2675 = vmatmul.msk.bf16.vlgmr.msra.gmra.mxu3 %vm664_vm4, %v3080_v45 }
 0x173   : > { %v1597_v55 = vpop.f32.mrf.mxu0 }
 0x174   : > { %v1441_v47 = vpop.f32.mrf.mxu3  ;;  %v991_v48 = vpop.f32.mrf.mxu1 }
 0x175   : > { %v1497_v2 = vadd.f32 %v1441_v47, %v1363_v0  ;;  %v992_v24 = vadd.f32 %v991_v48, %v3285_v59 }
 0x176   : > { %2693 = vmatmul.msk.bf16.vlgmr.msra.gmra.mxu0 %vm664_vm4, %v3203_v52 }
 0x177   : > { %v1309_v39 = vpop.f32.mrf.mxu2  ;;  %2638 = vmatmul.msk.bf16.gmra.mxu1 %vm664_vm4, %v3203_v52  ;;  %v3618_v16 = vadd.f32 %v1597_v55, %v1497_v2 }
 0x178   : > { %v1364_v29 = vadd.f32 %v1309_v39, %v989_v6 }
 0x17b   : > { %v1599_v18 = vpop.f32.mrf.mxu0 }
 0x17c   : > { %v1443_v34 = vpop.f32.mrf.mxu3  ;;  %2659 = vmatmul.msk.bf16.gmra.mxu2 %vm664_vm4, %v3209_v41  ;;  %v993_v45 = vpop.f32.mrf.mxu1 }
 0x17d   : > { %v1498_v5 = vadd.f32 %v1443_v34, %v1364_v29  ;;  %v994_v41 = vadd.f32 %v993_v45, %v3303_v3 }
 0x17f   : > { %v1312_v61 = vpop.f32.mrf.mxu2  ;;  %v3623_v26 = vadd.f32 %v1599_v18, %v1498_v5 }
 0x180   : > { %v1365_v57 = vadd.f32 %v1312_v61, %v992_v24 }
 0x181   : > { %2676 = vmatmul.msk.bf16.gmra.mxu3 %vm664_vm4, %v3170_v20 }
 0x183   : > { %v1602_v52 = vpop.f32.mrf.mxu0 }
 0x184   : > { %v1446_v51 = vpop.f32.mrf.mxu3  ;;  %v996_v38 = vpop.f32.mrf.mxu1 }
 0x185   : > { %v1499_v60 = vadd.f32 %v1446_v51, %v1365_v57  ;;  %v997_v0 = vadd.f32 %v996_v38, %v3322_v23 }
 0x186   : > { %2694 = vmatmul.msk.bf16.gmra.mxu0 %vm664_vm4, %v3223_v40 }
 0x187   : > { %v1314_v9 = vpop.f32.mrf.mxu2  ;;  %2639 = vmatmul.msk.bf16.gmra.mxu1 %vm664_vm4, %v3223_v40  ;;  %v3632_v59 = vadd.f32 %v1602_v52, %v1499_v60 }
 0x188   : > { %v1366_v43 = vadd.f32 %v1314_v9, %v994_v41 }
 0x18b   : > { %v1604_v17 = vpop.f32.mrf.mxu0 }
 0x18c   : > { %v1448_v63 = vpop.f32.mrf.mxu3  ;;  %2660 = vmatmul.msk.bf16.gmra.mxu2 %vm664_vm4, %v3231_v8  ;;  %v998_v20 = vpop.f32.mrf.mxu1 }
 0x18d   : > { %v1500_v15 = vadd.f32 %v1448_v63, %v1366_v43  ;;  %v999_v8 = vadd.f32 %v998_v20, %v3343_v1  ;;  %v4052_v43 = vld [vmem:[#allocation18_spill] sm:$0xff]  ;;  %v4053_v63 = vld [vmem:[#allocation16_spill] sm:$0xff] }
 0x18f   : > { %v1317_v55 = vpop.f32.mrf.mxu2  ;;  %v3637_v47 = vadd.f32 %v1604_v17, %v1500_v15 }
 0x190   : > { %v1367_v3 = vadd.f32 %v1317_v55, %v997_v0  ;;  %v4054_v55 = vld [vmem:[#allocation8_spill] sm:$0xff] }
 0x191   : > { %2677 = vmatmul.msk.bf16.gmra.mxu3 %vm664_vm4, %v2852_v62 }
 0x193   : > { %v1607_v40 = vpop.f32.mrf.mxu0 }
 0x194   : > { %v1451_v48 = vpop.f32.mrf.mxu3  ;;  %v1001_v2 = vpop.f32.mrf.mxu1 }
 0x195   : > { %v1501_v6 = vadd.f32 %v1451_v48, %v1367_v3  ;;  %v1002_v5 = vadd.f32 %v1001_v2, %v3365_v56  ;;  %v4055_v2 = vld [vmem:[#allocation21_spill] sm:$0xff] }
 0x196   : > { %2695 = vmatmul.msk.bf16.gmra.mxu0 %vm664_vm4, %v3251_v12 }
 0x197   : > { %v1319_v39 = vpop.f32.mrf.mxu2  ;;  %2640 = vmatmul.msk.bf16.gmra.mxu1 %vm664_vm4, %v3251_v12  ;;  %v3646_v23 = vadd.f32 %v1607_v40, %v1501_v6  ;;  %v4056_v6 = vld [vmem:[#allocation17_spill] sm:$0xff] }
 0x198   : > { %v1368_v29 = vadd.f32 %v1319_v39, %v999_v8 }
 0x19b   : > { %v1609_v18 = vpop.f32.mrf.mxu0 }
 0x19c   : > { %v1453_v34 = vpop.f32.mrf.mxu3  ;;  %2661 = vmatmul.msk.bf16.gmra.mxu2 %vm664_vm4, %v3259_v27  ;;  %v1003_v62 = vpop.f32.mrf.mxu1 }
 0x19d   : > { %v1502_v45 = vadd.f32 %v1453_v34, %v1368_v29  ;;  %v1004_v27 = vadd.f32 %v1003_v62, %v3380_v44 }
 0x19f   : > { %v1322_v24 = vpop.f32.mrf.mxu2  ;;  %v3651_v61 = vadd.f32 %v1609_v18, %v1502_v45  ;;  %v4057_v45 = vld [vmem:[#allocation22_spill] sm:$0xff] }
 0x1a0   : > { %v1369_v1 = vadd.f32 %v1322_v24, %v1002_v5 }
 0x1a1   : > { %2678 = vmatmul.msk.bf16.gmra.mxu3 %vm664_vm4, %v2926_v37 }
 0x1a3   : > { %v1612_v12 = vpop.f32.mrf.mxu0 }
 0x1a4   : > { %v1456_v57 = vpop.f32.mrf.mxu3  ;;  %v1006_v52 = vpop.f32.mrf.mxu1 }
 0x1a5   : > { %v1503_v51 = vadd.f32 %v1456_v57, %v1369_v1  ;;  %v1007_v20 = vadd.f32 %v1006_v52, %v4053_v63  ;;  %v4058_v1 = vld [vmem:[#allocation19_spill] sm:$0xff] }
 0x1a6   : > { %2696 = vmatmul.msk.bf16.gmra.mxu0 %vm664_vm4, %v3283_v33 }
 0x1a7   : > { %v1324_v38 = vpop.f32.mrf.mxu2  ;;  %2641 = vmatmul.msk.bf16.gmra.mxu1 %vm664_vm4, %v3283_v33  ;;  %v3660_v56 = vadd.f32 %v1612_v12, %v1503_v51 }
 0x1a8   : > { %v1370_v60 = vadd.f32 %v1324_v38, %v1004_v27  ;;  %v4059_v27 = vld [vmem:[#allocation14_spill] sm:$0xff] }
 0x1ab   : > { %v1614_v41 = vpop.f32.mrf.mxu0 }
 0x1ac   : > { %v1458_v9 = vpop.f32.mrf.mxu3  ;;  %2662 = vmatmul.msk.bf16.gmra.mxu2 %vm664_vm4, %v4052_v43  ;;  %v1008_v37 = vpop.f32.mrf.mxu1  ;;  %v4060_v43 = vld [vmem:[#allocation24_spill] sm:$0xff] }
 0x1ad   : > { %v1504_v17 = vadd.f32 %v1458_v9, %v1370_v60  ;;  %v1009_v8 = vadd.f32 %v1008_v37, %v4056_v6  ;;  %v4061_v37 = vld [vmem:[#allocation20_spill] sm:$0xff] }
 0x1af   : > { %v1327_v15 = vpop.f32.mrf.mxu2  ;;  %v3665_v0 = vadd.f32 %v1614_v41, %v1504_v17 }
 0x1b0   : > { %v1371_v44 = vadd.f32 %v1327_v15, %v1007_v20 }
 0x1b1   : > { %2679 = vmatmul.msk.bf16.gmra.mxu3 %vm664_vm4, %v4054_v55 }
 0x1b3   : > { %v1617_v33 = vpop.f32.mrf.mxu0 }
 0x1b4   : > { %v1461_v3 = vpop.f32.mrf.mxu3  ;;  %v1011_v40 = vpop.f32.mrf.mxu1 }
 0x1b5   : > { %v1505_v48 = vadd.f32 %v1461_v3, %v1371_v44  ;;  %v1012_v12 = vadd.f32 %v1011_v40, %v4058_v1  ;;  %v4066_v1 = vld [vmem:[#allocation25_spill] sm:$0xff] }
 0x1b6   : > { %2697 = vmatmul.msk.bf16.gmra.mxu0 %vm664_vm4, %v4055_v2 }
 0x1b7   : > { %v1329_v39 = vpop.f32.mrf.mxu2  ;;  %2642 = vmatmul.msk.bf16.gmra.mxu1 %vm664_vm4, %v4055_v2  ;;  %v3674_v29 = vadd.f32 %v1617_v33, %v1505_v48  ;;  %v4062_v33 = vld [vmem:[#allocation26_spill] sm:$0xff]  ;;  %v4063_v48 = vld [vmem:[#allocation23_spill] sm:$0xff] }
 0x1b8   : > { %v1372_v18 = vadd.f32 %v1329_v39, %v1009_v8 }
 0x1bb   : > { %v1619_v34 = vpop.f32.mrf.mxu0 }
 0x1bc   : > { %v1463_v62 = vpop.f32.mrf.mxu3  ;;  %2663 = vmatmul.msk.bf16.gmra.mxu2 %vm664_vm4, %v4057_v45  ;;  %v1013_v5 = vpop.f32.mrf.mxu1 }
 0x1bd   : > { %v1506_v24 = vadd.f32 %v1463_v62, %v1372_v18  ;;  %v1014_v17 = vadd.f32 %v1013_v5, %v4061_v37  ;;  %v4064_v18 = vld [vmem:[#allocation2_spill] sm:$0xff] }
 0x1bf   : > { %v1332_v57 = vpop.f32.mrf.mxu2  ;;  %v3679_v52 = vadd.f32 %v1619_v34, %v1506_v24  ;;  %v4065_v24 = vld [vmem:[#allocation28_spill] sm:$0xff] }
 0x1c0   : > { %v1373_v51 = vadd.f32 %v1332_v57, %v1012_v12 }
 0x1c1   : > { %2680 = vmatmul.msk.bf16.gmra.mxu3 %vm664_vm4, %v4059_v27 }
 0x1c3   : > { %v1622_v38 = vpop.f32.mrf.mxu0 }
 0x1c4   : > { %v1466_v60 = vpop.f32.mrf.mxu3  ;;  %v1016_v41 = vpop.f32.mrf.mxu1 }
 0x1c5   : > { %v1507_v9 = vadd.f32 %v1466_v60, %v1373_v51  ;;  %v1017_v2 = vadd.f32 %v1016_v41, %v4063_v48 }
 0x1c6   : > { %2698 = vmatmul.msk.bf16.gmra.mxu0 %vm664_vm4, %v4060_v43 }
 0x1c7   : > { %v1334_v63 = vpop.f32.mrf.mxu2  ;;  %2643 = vmatmul.msk.bf16.gmra.mxu1 %vm664_vm4, %v4060_v43  ;;  %v3688_v20 = vadd.f32 %v1622_v38, %v1507_v9  ;;  %v4067_v43 = vld [vmem:[#allocation27_spill] sm:$0xff] }
 0x1c8   : > { %v1374_v15 = vadd.f32 %v1334_v63, %v1014_v17 }
 0x1cb   : > { %v1624_v44 = vpop.f32.mrf.mxu0 }
 0x1cc   : > { %v1468_v55 = vpop.f32.mrf.mxu3  ;;  %2664 = vmatmul.msk.bf16.gmra.mxu2 %vm664_vm4, %v4062_v33  ;;  %v1018_v3 = vpop.f32.mrf.mxu1 }
 0x1cd   : > { %v1508_v40 = vadd.f32 %v1468_v55, %v1374_v15  ;;  %v1019_v12 = vadd.f32 %v1018_v3, %v4066_v1 }
 0x1cf   : > { %v1337_v6 = vpop.f32.mrf.mxu2  ;;  %v3693_v8 = vadd.f32 %v1624_v44, %v1508_v40  ;;  %v4068_v40 = vld [vmem:[#allocation29_spill] sm:$0xff] }
 0x1d0   : > { %v1375_v39 = vadd.f32 %v1337_v6, %v1017_v2 }
 0x1d1   : > { %2681 = vmatmul.msk.bf16.gmra.mxu3 %vm664_vm4, %v4064_v18 }
 0x1d3   : > { %v1627_v34 = vpop.f32.mrf.mxu0 }
 0x1d4   : > { %v1471_v62 = vpop.f32.mrf.mxu3  ;;  %v1021_v45 = vpop.f32.mrf.mxu1 }
 0x1d5   : > { %v1509_v5 = vadd.f32 %v1471_v62, %v1375_v39  ;;  %v1022_v37 = vadd.f32 %v1021_v45, %v4067_v43 }
 0x1d6   : > { %2699 = vmatmul.msk.bf16.gmra.mxu0 %vm664_vm4, %v4065_v24 }
 0x1d7   : > { %v1339_v57 = vpop.f32.mrf.mxu2  ;;  %2644 = vmatmul.msk.bf16.gmra.mxu1 %vm664_vm4, %v4065_v24  ;;  %v3702_v51 = vadd.f32 %v1627_v34, %v1509_v5 }
 0x1d8   : > { %v1376_v27 = vadd.f32 %v1339_v57, %v1019_v12 }
 0x1db   : > { %v1629_v38 = vpop.f32.mrf.mxu0 }
 0x1dc   : > { %v1473_v60 = vpop.f32.mrf.mxu3  ;;  %2665 = vmatmul.msk.bf16.gmra.mxu2 %vm664_vm4, %v3395_v19  ;;  %v1023_v41 = vpop.f32.mrf.mxu1 }
 0x1dd   : > { %v1510_v9 = vadd.f32 %v1473_v60, %v1376_v27  ;;  %v1024_v19 = vadd.f32 %v1023_v41, %v4068_v40 }
 0x1df   : > { %v1342_v17 = vpop.f32.mrf.mxu2  ;;  %v3707_v63 = vadd.f32 %v1629_v38, %v1510_v9 }
 0x1e0   : > { %v1377_v15 = vadd.f32 %v1342_v17, %v1022_v37 }
 0x1e1   : > { %2682 = vmatmul.msk.bf16.gmra.mxu3 %vm664_vm4, %v2951_v4 }
 0x1e3   : > { %v1632_v44 = vpop.f32.mrf.mxu0 }
 0x1e4   : > { %v1476_v55 = vpop.f32.mrf.mxu3  ;;  %v1697_v33 = vpop.f32.mrf.mxu1 }
 0x1e5   : > { %v1511_v3 = vadd.f32 %v1476_v55, %v1377_v15  ;;  %v1777_v62 = vadd.f32 %v1697_v33, %v3410_v32  ;;  %v4069_v33 = vld [vmem:[#allocation15_spill] sm:$0xff] }
 0x1e6   : > { %2700 = vmatmul.msk.bf16.gmra.mxu0 %vm664_vm4, %v3412_v10 }
 0x1e7   : > { %v1344_v48 = vpop.f32.mrf.mxu2  ;;  %2645 = vmatmul.msk.bf16.gmra.mxu1 %vm664_vm4, %v3412_v10  ;;  %v3716_v2 = vadd.f32 %v1632_v44, %v1511_v3 }
 0x1e8   : > { %v1378_v6 = vadd.f32 %v1344_v48, %v1024_v19 }
 0x1eb   : > { %v1634_v39 = vpop.f32.mrf.mxu0 }
 0x1ec   : > { %v1478_v18 = vpop.f32.mrf.mxu3  ;;  %2666 = vmatmul.msk.bf16.gmra.mxu2 %vm664_vm4, %v3419_v42  ;;  %v1699_v4 = vpop.f32.mrf.mxu1  ;;  %v3728_v42 = vld [vmem:[%s3950_s2] ss:$0 sm:$0xff] }
 0x1ed   : > { %v1512_v34 = vadd.f32 %v1478_v18, %v1378_v6  ;;  %v1778_v27 = vadd.f32 %v1699_v4, %v3423_v35  ;;  %v4070_v18 = vld [vmem:[#allocation31_spill] sm:$0xff]  ;;  %v4071_v4 = vld [vmem:[#allocation9_spill] sm:$0xff] }
 0x1ef   : > { %v1831_v45 = vpop.f32.mrf.mxu2  ;;  %v3721_v5 = vadd.f32 %v1634_v39, %v1512_v34 }
 0x1f0   : > { %v1911_v10 = vadd.f32 %v1831_v45, %v1777_v62 }
 0x1f1   : > { %2683 = vmatmul.msk.bf16.gmra.mxu3 %vm664_vm4, %v3036_v25 }
 0x1f3   : > { %v2127_v24 = vpop.f32.mrf.mxu0 }
 0x1f4   : > { %v1987_v1 = vpop.f32.mrf.mxu3  ;;  %v1702_v12 = vpop.f32.mrf.mxu1 }
 0x1f5   : > { %v2067_v57 = vadd.f32 %v1987_v1, %v1911_v10  ;;  %v1779_v15 = vadd.f32 %v1702_v12, %v3436_v21 }
 0x1f6   : > { %2701 = vmatmul.msk.bf16.gmra.mxu0 %vm664_vm4, %v3438_v13 }
 0x1f7   : > { %v2207_v32 = vadd.f32 %v2127_v24, %v2067_v57  ;;  %v1833_v38 = vpop.f32.mrf.mxu2  ;;  %2646 = vmatmul.msk.bf16.gmra.mxu1 %vm664_vm4, %v3438_v13  ;;  %v4072_v57 = vld [vmem:[#allocation32_spill] sm:$0xff] }
 0x1f8   : > { %v1912_v60 = vadd.f32 %v1833_v38, %v1778_v27 }
 0x1f9   : > { %v2243_v25 = vadd.f32 %v3728_v42, %v2207_v32 }
 0x1fb   : > { %vm2275_vm8 = vcmp.gt.f32.partialorder %v2243_v25, 0.0  ;;  %v2307_v41 = vmul.f32 0.01, %v2243_v25  ;;  %v2129_v9 = vpop.f32.mrf.mxu0 }
 0x1fc   : > { %v1989_v43 = vpop.f32.mrf.mxu3  ;;  %2667 = vmatmul.msk.bf16.gmra.mxu2 %vm664_vm4, %v3445_v50  ;;  %v1704_v35 = vpop.f32.mrf.mxu1 }
 0x1fd   : > { %v2339_v13 = vsel %vm2275_vm8, %v2243_v25, %v2307_v41  ;;  %v2068_v37 = vadd.f32 %v1989_v43, %v1912_v60  ;;  %v1780_v34 = vadd.f32 %v1704_v35, %v4071_v4  ;;  %v4073_v60 = vld [vmem:[#allocation30_spill] sm:$0xff]  ;;  %v4074_v35 = vld [vmem:[#allocation3_spill] sm:$0xff] }
 0x1fe   : > { %2372 = vst.msk [vmem:[%s3740_s16] sm:$0xff] %vm2371_vm9, %v2339_v13 }
 0x1ff   : > { %v2208_v17 = vadd.f32 %v2129_v9, %v2068_v37  ;;  %v1836_v44 = vpop.f32.mrf.mxu2 }
 0x200   : > { %v1913_v3 = vadd.f32 %v1836_v44, %v1779_v15 }
 0x201   : > { %v2244_v55 = vadd.f32 %v3728_v42, %v2208_v17  ;;  %2684 = vmatmul.msk.bf16.gmra.mxu3 %vm664_vm4, %v4069_v33 }
 0x203   : > { %vm2276_vm10 = vcmp.gt.f32.partialorder %v2244_v55, 0.0  ;;  %v2308_v40 = vmul.f32 0.01, %v2244_v55  ;;  %v2132_v19 = vpop.f32.mrf.mxu0 }
 0x204   : > { %v1992_v50 = vpop.f32.mrf.mxu3  ;;  %v1707_v48 = vpop.f32.mrf.mxu1 }
 0x205   : > { %v2340_v6 = vsel %vm2276_vm10, %v2244_v55, %v2308_v40  ;;  %v2069_v39 = vadd.f32 %v1992_v50, %v1913_v3  ;;  %v1781_v41 = vadd.f32 %v1707_v48, %v4073_v60  ;;  %v4075_v3 = vld [vmem:[#allocation35_spill] sm:$0xff] }
 0x206   : > { %2373 = vst.msk [vmem:[%s3740_s16 + $0x8] sm:$0xff] %vm2371_vm9, %v2340_v6  ;;  %2702 = vmatmul.msk.bf16.gmra.mxu0 %vm664_vm4, %v4070_v18 }
 0x207   : > { %v2209_v21 = vadd.f32 %v2132_v19, %v2069_v39  ;;  %v1838_v62 = vpop.f32.mrf.mxu2  ;;  %2647 = vmatmul.msk.bf16.gmra.mxu1 %vm664_vm4, %v4070_v18  ;;  %v4076_v19 = vld [vmem:[#allocation33_spill] sm:$0xff] }
 0x208   : > { %v1914_v10 = vadd.f32 %v1838_v62, %v1780_v34  ;;  %v4077_v34 = vld [vmem:[#allocation36_spill] sm:$0xff] }
 0x209   : > { %v2245_v45 = vadd.f32 %v3728_v42, %v2209_v21 }
 0x20b   : > { %vm2277_vm11 = vcmp.gt.f32.partialorder %v2245_v45, 0.0  ;;  %v2309_v24 = vmul.f32 0.01, %v2245_v45  ;;  %v2134_v1 = vpop.f32.mrf.mxu0 }
 0x20c   : > { %v1994_v12 = vpop.f32.mrf.mxu3  ;;  %2668 = vmatmul.msk.bf16.gmra.mxu2 %vm664_vm4, %v4072_v57  ;;  %v1709_v32 = vpop.f32.mrf.mxu1 }
 0x20d   : > { %v2341_v27 = vsel %vm2277_vm11, %v2245_v45, %v2309_v24  ;;  %v2070_v38 = vadd.f32 %v1994_v12, %v1914_v10  ;;  %v1782_v50 = vadd.f32 %v1709_v32, %v4076_v19 }
 0x20e   : > { %2374 = vst.msk [vmem:[%s3740_s16 + $0x10] sm:$0xff] %vm2371_vm9, %v2341_v27  ;;  %v4079_v27 = vld [vmem:[#allocation4_spill] sm:$0xff] }
 0x20f   : > { %v2210_v25 = vadd.f32 %v2134_v1, %v2070_v38  ;;  %v1841_v9 = vpop.f32.mrf.mxu2  ;;  %v4078_v1 = vld [vmem:[#allocation34_spill] sm:$0xff] }
 0x210   : > { %v1915_v13 = vadd.f32 %v1841_v9, %v1781_v41 }
 0x211   : > { %v2246_v43 = vadd.f32 %v3728_v42, %v2210_v25  ;;  %2685 = vmatmul.msk.bf16.gmra.mxu3 %vm664_vm4, %v4074_v35 }
 0x213   : > { %vm2278_vm12 = vcmp.gt.f32.partialorder %v2246_v43, 0.0  ;;  %v2310_v37 = vmul.f32 0.01, %v2246_v43  ;;  %v2137_v17 = vpop.f32.mrf.mxu0 }
 0x214   : > { %v1997_v15 = vpop.f32.mrf.mxu3  ;;  %v1712_v44 = vpop.f32.mrf.mxu1 }
 0x215   : > { %v2342_v55 = vsel %vm2278_vm12, %v2246_v43, %v2310_v37  ;;  %v2071_v33 = vadd.f32 %v1997_v15, %v1915_v13  ;;  %v1783_v12 = vadd.f32 %v1712_v44, %v4078_v1  ;;  %v4080_v13 = vld [vmem:[#allocation39_spill] sm:$0xff] }
 0x216   : > { %2375 = vst.msk [vmem:[%s3740_s16 + $0x18] sm:$0xff] %vm2371_vm9, %v2342_v55  ;;  %2703 = vmatmul.msk.bf16.gmra.mxu0 %vm664_vm4, %v4075_v3 }
 0x217   : > { %v2211_v40 = vadd.f32 %v2137_v17, %v2071_v33  ;;  %v1843_v48 = vpop.f32.mrf.mxu2  ;;  %2648 = vmatmul.msk.bf16.gmra.mxu1 %vm664_vm4, %v4075_v3  ;;  %v4081_v17 = vld [vmem:[#allocation37_spill] sm:$0xff] }
 0x218   : > { %v1916_v39 = vadd.f32 %v1843_v48, %v1782_v50  ;;  %v4082_v50 = vld [vmem:[#allocation6_spill] sm:$0xff] }
 0x219   : > { %v2247_v6 = vadd.f32 %v3728_v42, %v2211_v40 }
 0x21b   : > { %vm2279_vm13 = vcmp.gt.f32.partialorder %v2247_v6, 0.0  ;;  %v2311_v18 = vmul.f32 0.01, %v2247_v6  ;;  %v2139_v21 = vpop.f32.mrf.mxu0 }
 0x21c   : > { %v1999_v4 = vpop.f32.mrf.mxu3  ;;  %2669 = vmatmul.msk.bf16.gmra.mxu2 %vm664_vm4, %v4077_v34  ;;  %v1714_v62 = vpop.f32.mrf.mxu1 }
 0x21d   : > { %v2343_v45 = vsel %vm2279_vm13, %v2247_v6, %v2311_v18  ;;  %v2072_v10 = vadd.f32 %v1999_v4, %v1916_v39  ;;  %v1784_v15 = vadd.f32 %v1714_v62, %v4081_v17 }
 0x21e   : > { %2376 = vst.msk [vmem:[%s3740_s16 + $0x20] sm:$0xff] %vm2371_vm9, %v2343_v45  ;;  %v4084_v45 = vld [vmem:[#allocation10_spill] sm:$0xff] }
 0x21f   : > { %v2212_v24 = vadd.f32 %v2139_v21, %v2072_v10  ;;  %v1846_v57 = vpop.f32.mrf.mxu2  ;;  %v4083_v21 = vld [vmem:[#allocation38_spill] sm:$0xff] }
 0x220   : > { %v1917_v38 = vadd.f32 %v1846_v57, %v1783_v12 }
 0x221   : > { %v2248_v32 = vadd.f32 %v3728_v42, %v2212_v24  ;;  %2686 = vmatmul.msk.bf16.gmra.mxu3 %vm664_vm4, %v4079_v27 }
 0x223   : > { %vm2280_vm14 = vcmp.gt.f32.partialorder %v2248_v32, 0.0  ;;  %v2312_v25 = vmul.f32 0.01, %v2248_v32  ;;  %v2142_v60 = vpop.f32.mrf.mxu0 }
 0x224   : > { %v2002_v41 = vpop.f32.mrf.mxu3  ;;  %v1717_v9 = vpop.f32.mrf.mxu1 }
 0x225   : > { %v2344_v43 = vsel %vm2280_vm14, %v2248_v32, %v2312_v25  ;;  %v2073_v35 = vadd.f32 %v2002_v41, %v1917_v38  ;;  %v1785_v4 = vadd.f32 %v1717_v9, %v4083_v21  ;;  %v4085_v38 = vld [vmem:[#allocation41_spill] sm:$0xff] }
 0x226   : > { %2377 = vst.msk [vmem:[%s3740_s16 + $0x28] sm:$0xff] %vm2371_vm9, %v2344_v43  ;;  %2704 = vmatmul.msk.bf16.gmra.mxu0 %vm664_vm4, %v4080_v13 }
 0x227   : > { %v2213_v37 = vadd.f32 %v2142_v60, %v2073_v35  ;;  %v1848_v44 = vpop.f32.mrf.mxu2  ;;  %2649 = vmatmul.msk.bf16.gmra.mxu1 %vm664_vm4, %v4080_v13  ;;  %v4086_v60 = vld [vmem:[#allocation7_spill] sm:$0xff] }
 0x228   : > { %v1918_v33 = vadd.f32 %v1848_v44, %v1784_v15 }
 0x229   : > { %v2249_v55 = vadd.f32 %v3728_v42, %v2213_v37 }
 0x22b   : > { %vm2281_vm15 = vcmp.gt.f32.partialorder %v2249_v55, 0.0  ;;  %v2313_v3 = vmul.f32 0.01, %v2249_v55  ;;  %v2144_v40 = vpop.f32.mrf.mxu0 }
 0x22c   : > { %v2004_v19 = vpop.f32.mrf.mxu3  ;;  %2670 = vmatmul.msk.bf16.gmra.mxu2 %vm664_vm4, %v4082_v50  ;;  %v1719_v48 = vpop.f32.mrf.mxu1 }
 0x22d   : > { %v2345_v6 = vsel %vm2281_vm15, %v2249_v55, %v2313_v3  ;;  %v2074_v39 = vadd.f32 %v2004_v19, %v1918_v33  ;;  %v1786_v41 = vadd.f32 %v1719_v48, %v4086_v60  ;;  %v4087_v3 = vld [vmem:[#allocation40_spill] sm:$0xff] }
 0x22e   : > { %2378 = vst.msk [vmem:[%s3740_s16 + $0x30] sm:$0xff] %vm2371_vm9, %v2345_v6  ;;  %v3815_v6 = vld [vmem:[%s2813_s27 + $0xcc] sm:$0xf] }
 0x22f   : > { %v2214_v18 = vadd.f32 %v2144_v40, %v2074_v39  ;;  %v1851_v34 = vpop.f32.mrf.mxu2 }
 0x230   : > { %v1919_v10 = vadd.f32 %v1851_v34, %v1785_v4  ;;  %v3819_v4 = vld [vmem:[%s2813_s27 + $0xd0] sm:$0xf] }
 0x231   : > { %v2250_v62 = vadd.f32 %v3728_v42, %v2214_v18  ;;  %2687 = vmatmul.msk.bf16.gmra.mxu3 %vm664_vm4, %v4084_v45  ;;  %v4088_v18 = vld [vmem:[#allocation42_spill] sm:$0xff] }
 0x232   : > { %v1672_v21 = vrot.slane %v4088_v18, 5 }
 0x233   : > { %vm2282_vm0 = vcmp.gt.f32.partialorder %v2250_v62, 0.0  ;;  %v2314_v24 = vmul.f32 0.01, %v2250_v62  ;;  %v2147_v1 = vpop.f32.mrf.mxu0 }
 0x234   : > { %v2007_v12 = vpop.f32.mrf.mxu3  ;;  %v1722_v57 = vpop.f32.mrf.mxu1  ;;  %v1674_v60 = vrot.slane %v1672_v21, 4 }
 0x235   : > { %v2346_v32 = vsel %vm2282_vm0, %v2250_v62, %v2314_v24  ;;  %v2075_v27 = vadd.f32 %v2007_v12, %v1919_v10  ;;  %v1787_v40 = vadd.f32 %v1722_v57, %v4087_v3  ;;  %v4089_v24 = vld [vmem:[#allocation5_spill] sm:$0xff]  ;;  %v1947_v12 = vshll.u32 %v3815_v6, 16 }
 0x236   : > { %2379 = vst.msk [vmem:[%s3740_s16 + $0x38] sm:$0xff] %vm2371_vm9, %v2346_v32  ;;  %2705 = vmatmul.msk.bf16.gmra.mxu0 %vm664_vm4, %v4085_v38  ;;  %v1953_v57 = vshll.u32 %v3819_v4, 16  ;;  %v1957_v32 = vshrl.u32 %v3819_v4, 16 }
 0x237   : > { %v2215_v25 = vadd.f32 %v2147_v1, %v2075_v27  ;;  %v1853_v9 = vpop.f32.mrf.mxu2  ;;  %2650 = vmatmul.msk.bf16.gmra.mxu1 %vm664_vm4, %v4085_v38  ;;  %v2635_v1 = vrot.slane %v4089_v24, 9 }
 0x238   : > { %v1920_v35 = vadd.f32 %v1853_v9, %v1786_v41  ;;  %v1675_v41 = vrot.slane %v3565_v11, 5 }
 0x239   : > { %v2251_v43 = vadd.f32 %v3728_v42, %v2215_v25 }
 0x23b   : > { %vm2283_vm1 = vcmp.gt.f32.partialorder %v2251_v43, 0.0  ;;  %v2315_v13 = vmul.f32 0.01, %v2251_v43  ;;  %v2149_v37 = vpop.f32.mrf.mxu0 }
 0x23c   : > { %v2009_v17 = vpop.f32.mrf.mxu3  ;;  %2671 = vmatmul.msk.bf16.gmra.mxu2 %vm664_vm4, %v3558_v30  ;;  %v1724_v15 = vpop.f32.mrf.mxu1 }
 0x23d   : > { %v2347_v44 = vsel %vm2283_vm1, %v2251_v43, %v2315_v13  ;;  %v2076_v55 = vadd.f32 %v2009_v17, %v1920_v35  ;;  %v1788_v38 = vadd.f32 %v1724_v15, %v3562_v49  ;;  %v1673_v35 = vsel %vm3143_vm7, %v2635_v1, %v1672_v21 }
 0x23e   : > { %2380 = vst.msk [vmem:[%s3740_s16 + $0x40] sm:$0xff] %vm2371_vm9, %v2347_v44  ;;  %v1955_v17 = vrot.slane %v1953_v57, 5  ;;  %v1959_v44 = vrot.slane %v1957_v32, 4  ;;  %v2102_v32 = vrot.slane %v3819_v4, 5 }
 0x23f   : > { %v2216_v33 = vadd.f32 %v2149_v37, %v2076_v55  ;;  %v1856_v19 = vpop.f32.mrf.mxu2  ;;  %v1949_v37 = vrot.slane %v1947_v12, 5  ;;  %v225_v55 = vld [vmem:[%s2813_s27 + $0xd4] sm:$0x1] }
 0x240   : > { %v1921_v48 = vadd.f32 %v1856_v19, %v1787_v40  ;;  %v1679_v19 = vunpack.c.l.b16 %v1673_v35  ;;  %v2105_v35 = vrot.slane %v225_v55, 5 }
 0x241   : > { %v2252_v50 = vadd.f32 %v3728_v42, %v2216_v33  ;;  %2688 = vmatmul.msk.bf16.gmra.mxu3 %vm664_vm4, %v3152_v53  ;;  %v1944_v53 = vshrl.u32 %v3815_v6, 16 }
 0x243   : > { %vm2284_vm2 = vcmp.gt.f32.partialorder %v2252_v50, 0.0  ;;  %v2316_v30 = vmul.f32 0.01, %v2252_v50  ;;  %v2152_v39 = vpop.f32.mrf.mxu0  ;;  %v1946_v13 = vrot.slane %v1944_v53, 4 }
 0x244   : > { %v2012_v34 = vpop.f32.mrf.mxu3  ;;  %v1727_v62 = vpop.f32.mrf.mxu1 }
 0x245   : > { %v2348_v45 = vsel %vm2284_vm2, %v2252_v50, %v2316_v30  ;;  %v2077_v10 = vadd.f32 %v2012_v34, %v1921_v48  ;;  %v1950_v48 = vor.u32 %v1949_v37, %v1946_v13  ;;  %v1960_v30 = vor.u32 %v1959_v44, %v1955_v17  ;;  %v2729_v13 = vld [vmem:[%s2813_s27 + $0xcc] sm:$0xff] }
 0x246   : > { %2381 = vst.msk [vmem:[%s3740_s16 + $0x48] sm:$0xff] %vm2371_vm9, %v2348_v45  ;;  %2706 = vmatmul.msk.bf16.gmra.mxu0 %vm664_vm4, %v3581_v46  ;;  %v1789_v21 = vadd.f32 %v1727_v62, %v3579_v7 }
 0x247   : > { %v2217_v27 = vadd.f32 %v2152_v39, %v2077_v10  ;;  %v1858_v25 = vpop.f32.mrf.mxu2  ;;  %2651 = vmatmul.msk.bf16.gmra.mxu1 %vm664_vm4, %v3581_v46  ;;  %v1676_v46 = vsel %vm3143_vm7, %v1674_v60, %v1675_v41  ;;  %v1963_v39 = vshll.u32 %v225_v55, 16  ;;  %v1951_v24 = vrot.slane %v1950_v48, 4 }
 0x248   : > { %v1922_v43 = vadd.f32 %v1858_v25, %v1788_v38  ;;  %v1680_v50 = vunpack.c.l.b16 %v1676_v46  ;;  %v1961_v1 = vrot.slane %v1960_v30, 4  ;;  %v2691_v60 = vrot.slane %v3815_v6, 9 }
 0x249   : > { %v2253_v9 = vadd.f32 %v3728_v42, %v2217_v27  ;;  %v1965_v53 = vrot.slane %v1963_v39, 5 }
 0x24a   : > { %v1681_v10 = vpack.c.b16 %v1680_v50, %v1679_v19  ;;  %v2103_v6 = vsel %vm3143_vm7, %v2691_v60, %v2102_v32 }
 0x24b   : > { %vm2285_vm5 = vcmp.gt.f32.partialorder %v2253_v9, 0.0  ;;  %v2317_v49 = vmul.f32 0.01, %v2253_v9  ;;  %v2154_v15 = vpop.f32.mrf.mxu0  ;;  %v1966_v25 = vsel %vm2840_vm3, %v1961_v1, %v1965_v53 }
 0x24c   : > { %v2014_v33 = vpop.f32.mrf.mxu3  ;;  %2672 = vmatmul.msk.bf16.gmra.mxu2 %vm664_vm4, %v3590_v54  ;;  %v1729_v11 = vpop.f32.mrf.mxu1 }
 0x24d   : > { %v2349_v3 = vsel %vm2285_vm5, %v2253_v9, %v2317_v49  ;;  %v2078_v40 = vadd.f32 %v2014_v33, %v1922_v43  ;;  %v1790_v4 = vadd.f32 %v1729_v11, %v3593_v28  ;;  %v2104_v43 = vrot.slane %v2102_v32, 4 }
 0x24e   : > { %2382 = vst.msk [vmem:[%s3740_s16 + $0x50] sm:$0xff] %vm2371_vm9, %v2349_v3 }
 0x24f   : > { %v2218_v18 = vadd.f32 %v2154_v15, %v2078_v40  ;;  %v1861_v34 = vpop.f32.mrf.mxu2  ;;  %v2106_v28 = vsel %vm3143_vm7, %v2104_v43, %v2105_v35  ;;  %v2109_v40 = vunpack.c.l.b16 %v2103_v6 }
 0x250   : > { %v1923_v54 = vadd.f32 %v1861_v34, %v1789_v21  ;;  %v2110_v19 = vunpack.c.l.b16 %v2106_v28 }
 0x251   : > { %v2254_v45 = vadd.f32 %v3728_v42, %v2218_v18  ;;  %2689 = vmatmul.msk.bf16.gmra.mxu3 %vm664_vm4, %v3597_v22  ;;  %v1956_v22 = vsel %vm2840_vm3, %v1951_v24, %v1955_v17  ;;  %v1970_v17 = vunpack.c.l.b16 %v1966_v25 }
 0x252   : > { %v1969_v49 = vunpack.c.l.b16 %v1956_v22  ;;  %v2111_v18 = vpack.c.b16 %v2110_v19, %v2109_v40 }
 0x253   : > { %vm2286_vm6 = vcmp.gt.f32.partialorder %v2254_v45, 0.0  ;;  %v2318_v12 = vmul.f32 0.01, %v2254_v45  ;;  %v2157_v57 = vpop.f32.mrf.mxu0 }
 0x254   : > { %v2017_v27 = vpop.f32.mrf.mxu3  ;;  %v1732_v7 = vpop.f32.mrf.mxu1  ;;  %v1971_v3 = vpack.c.b16 %v1970_v17, %v1969_v49 }
 0x255   : > { %v2350_v62 = vsel %vm2286_vm6, %v2254_v45, %v2318_v12  ;;  %v2079_v38 = vadd.f32 %v2017_v27, %v1923_v54  ;;  %v1791_v48 = vadd.f32 %v1732_v7, %v3604_v58 }
 0x256   : > { %2383 = vst.msk [vmem:[%s3740_s16 + $0x58] sm:$0xff] %vm2371_vm9, %v2350_v62  ;;  %2707 = vmatmul.msk.bf16.gmra.mxu0 %vm664_vm4, %v1681_v10 }
 0x257   : > { %v2219_v41 = vadd.f32 %v2157_v57, %v2079_v38  ;;  %v1863_v9 = vpop.f32.mrf.mxu2  ;;  %2652 = vmatmul.msk.bf16.gmra.mxu1 %vm664_vm4, %v1681_v10 }
 0x258   : > { %v1924_v44 = vadd.f32 %v1863_v9, %v1790_v4 }
 0x259   : > { %v2255_v37 = vadd.f32 %v3728_v42, %v2219_v41 }
 0x25b   : > { %vm2287_vm8 = vcmp.gt.f32.partialorder %v2255_v37, 0.0  ;;  %v2319_v36 = vmul.f32 0.01, %v2255_v37  ;;  %v2159_v15 = vpop.f32.mrf.mxu0 }
 0x25c   : > { %v2019_v46 = vpop.f32.mrf.mxu3  ;;  %2673 = vmatmul.msk.bf16.gmra.mxu2 %vm664_vm4, %v2729_v13  ;;  %v1734_v55 = vpop.f32.mrf.mxu1 }
 0x25d   : > { %v2351_v33 = vsel %vm2287_vm8, %v2255_v37, %v2319_v36  ;;  %v2080_v11 = vadd.f32 %v2019_v46, %v1924_v44  ;;  %v1792_v1 = vadd.f32 %v1734_v55, %v3609_v31 }
 0x25e   : > { %2384 = vst.msk [vmem:[%s3740_s16 + $0x60] sm:$0xff] %vm2371_vm9, %v2351_v33 }
 0x25f   : > { %v2220_v50 = vadd.f32 %v2159_v15, %v2080_v11  ;;  %v1866_v30 = vpop.f32.mrf.mxu2 }
 0x260   : > { %v1925_v14 = vadd.f32 %v1866_v30, %v1791_v48 }
 0x261   : > { %v2256_v39 = vadd.f32 %v3728_v42, %v2220_v50  ;;  %2690 = vmatmul.msk.bf16.gmra.mxu3 %vm664_vm4, %v1971_v3 }
 0x263   : > { %vm2288_vm3 = vcmp.gt.f32.partialorder %v2256_v39, 0.0  ;;  %v2320_v21 = vmul.f32 0.01, %v2256_v39  ;;  %v2162_v34 = vpop.f32.mrf.mxu0 }
 0x264   : > { %v2022_v45 = vpop.f32.mrf.mxu3  ;;  %v1737_v54 = vpop.f32.mrf.mxu1 }
 0x265   : > { %v2352_v10 = vsel %vm2288_vm3, %v2256_v39, %v2320_v21  ;;  %v2081_v24 = vadd.f32 %v2022_v45, %v1925_v14  ;;  %v1793_v60 = vadd.f32 %v1737_v54, %v3618_v16 }
 0x266   : > { %2385 = vst.msk [vmem:[%s3740_s16 + $0x68] sm:$0xff] %vm2371_vm9, %v2352_v10  ;;  %2708 = vmatmul.msk.bf16.gmra.mxu0 %vm664_vm4, %v2111_v18 }
 0x267   : > { %v2221_v58 = vadd.f32 %v2162_v34, %v2081_v24  ;;  %v1868_v53 = vpop.f32.mrf.mxu2 }
 0x268   : > { %v1926_v57 = vadd.f32 %v1868_v53, %v1792_v1 }
 0x269   : > { %v2257_v12 = vadd.f32 %v3728_v42, %v2221_v58 }
 0x26b   : > { %vm2289_vm7 = vcmp.gt.f32.partialorder %v2257_v12, 0.0  ;;  %v2321_v32 = vmul.f32 0.01, %v2257_v12  ;;  %v2164_v27 = vpop.f32.mrf.mxu0 }
 0x26c   : > { %v2024_v7 = vpop.f32.mrf.mxu3  ;;  %v1739_v62 = vpop.f32.mrf.mxu1 }
 0x26d   : > { %v2353_v38 = vsel %vm2289_vm7, %v2257_v12, %v2321_v32  ;;  %v2082_v22 = vadd.f32 %v2024_v7, %v1926_v57  ;;  %v1794_v17 = vadd.f32 %v1739_v62, %v3623_v26 }
 0x26e   : > { %2386 = vst.msk [vmem:[%s3740_s16 + $0x70] sm:$0xff] %vm2371_vm9, %v2353_v38 }
 0x26f   : > { %v2222_v25 = vadd.f32 %v2164_v27, %v2082_v22  ;;  %v1871_v41 = vpop.f32.mrf.mxu2 }
 0x270   : > { %v1927_v4 = vadd.f32 %v1871_v41, %v1793_v60 }
 0x271   : > { %v2258_v31 = vadd.f32 %v3728_v42, %v2222_v25 }
 0x273   : > { %vm2290_vm4 = vcmp.gt.f32.partialorder %v2258_v31, 0.0  ;;  %v2322_v9 = vmul.f32 0.01, %v2258_v31  ;;  %v2167_v43 = vpop.f32.mrf.mxu0 }
 0x274   : > { %v2027_v35 = vpop.f32.mrf.mxu3  ;;  %v1742_v13 = vpop.f32.mrf.mxu1 }
 0x275   : > { %v2354_v37 = vsel %vm2290_vm4, %v2258_v31, %v2322_v9  ;;  %v2083_v44 = vadd.f32 %v2027_v35, %v1927_v4  ;;  %v1795_v40 = vadd.f32 %v1742_v13, %v3632_v59 }
 0x276   : > { %2387 = vst.msk [vmem:[%s3740_s16 + $0x78] sm:$0xff] %vm2371_vm9, %v2354_v37 }
 0x277   : > { %v2223_v49 = vadd.f32 %v2167_v43, %v2083_v44  ;;  %v1873_v36 = vpop.f32.mrf.mxu2 }
 0x278   : > { %v1928_v15 = vadd.f32 %v1873_v36, %v1794_v17 }
 0x279   : > { %v2259_v16 = vadd.f32 %v3728_v42, %v2223_v49 }
 0x27b   : > { %vm2291_vm10 = vcmp.gt.f32.partialorder %v2259_v16, 0.0  ;;  %v2323_v6 = vmul.f32 0.01, %v2259_v16  ;;  %v2169_v28 = vpop.f32.mrf.mxu0 }
 0x27c   : > { %v2029_v46 = vpop.f32.mrf.mxu3  ;;  %v1744_v55 = vpop.f32.mrf.mxu1 }
 0x27d   : > { %v2355_v33 = vsel %vm2291_vm10, %v2259_v16, %v2323_v6  ;;  %v2084_v11 = vadd.f32 %v2029_v46, %v1928_v15  ;;  %v1796_v45 = vadd.f32 %v1744_v55, %v3637_v47 }
 0x27e   : > { %2388 = vst.msk [vmem:[%s3740_s16 + $0x80] sm:$0xff] %vm2371_vm9, %v2355_v33 }
 0x27f   : > { %v2224_v3 = vadd.f32 %v2169_v28, %v2084_v11  ;;  %v1876_v19 = vpop.f32.mrf.mxu2 }
 0x280   : > { %v1929_v50 = vadd.f32 %v1876_v19, %v1795_v40 }
 0x281   : > { %v2260_v26 = vadd.f32 %v3728_v42, %v2224_v3 }
 0x283   : > { %vm2292_vm11 = vcmp.gt.f32.partialorder %v2260_v26, 0.0  ;;  %v2324_v48 = vmul.f32 0.01, %v2260_v26  ;;  %v2172_v30 = vpop.f32.mrf.mxu0 }
 0x284   : > { %v2032_v39 = vpop.f32.mrf.mxu3  ;;  %v1747_v14 = vpop.f32.mrf.mxu1 }
 0x285   : > { %v2356_v18 = vsel %vm2292_vm11, %v2260_v26, %v2324_v48  ;;  %v2085_v21 = vadd.f32 %v2032_v39, %v1929_v50  ;;  %v1797_v27 = vadd.f32 %v1747_v14, %v3646_v23 }
 0x286   : > { %2389 = vst.msk [vmem:[%s3740_s16 + $0x88] sm:$0xff] %vm2371_vm9, %v2356_v18 }
 0x287   : > { %v2225_v34 = vadd.f32 %v2172_v30, %v2085_v21  ;;  %v1878_v54 = vpop.f32.mrf.mxu2 }
 0x288   : > { %v1930_v10 = vadd.f32 %v1878_v54, %v1796_v45 }
 0x289   : > { %v2261_v59 = vadd.f32 %v3728_v42, %v2225_v34 }
 0x28b   : > { %vm2293_vm12 = vcmp.gt.f32.partialorder %v2261_v59, 0.0  ;;  %v2325_v24 = vmul.f32 0.01, %v2261_v59  ;;  %v2174_v58 = vpop.f32.mrf.mxu0 }
 0x28c   : > { %v2034_v1 = vpop.f32.mrf.mxu3  ;;  %v1749_v53 = vpop.f32.mrf.mxu1 }
 0x28d   : > { %v2357_v12 = vsel %vm2293_vm12, %v2261_v59, %v2325_v24  ;;  %v2086_v57 = vadd.f32 %v2034_v1, %v1930_v10  ;;  %v1798_v9 = vadd.f32 %v1749_v53, %v3651_v61 }
 0x28e   : > { %2390 = vst.msk [vmem:[%s3740_s16 + $0x90] sm:$0xff] %vm2371_vm9, %v2357_v12 }
 0x28f   : > { %v2226_v32 = vadd.f32 %v2174_v58, %v2086_v57  ;;  %v1881_v7 = vpop.f32.mrf.mxu2 }
 0x290   : > { %v1931_v62 = vadd.f32 %v1881_v7, %v1797_v27 }
 0x291   : > { %v2262_v47 = vadd.f32 %v3728_v42, %v2226_v32 }
 0x293   : > { %vm2294_vm13 = vcmp.gt.f32.partialorder %v2262_v47, 0.0  ;;  %v2326_v38 = vmul.f32 0.01, %v2262_v47  ;;  %v2177_v22 = vpop.f32.mrf.mxu0 }
 0x294   : > { %v2037_v25 = vpop.f32.mrf.mxu3  ;;  %v1752_v60 = vpop.f32.mrf.mxu1 }
 0x295   : > { %v2358_v41 = vsel %vm2294_vm13, %v2262_v47, %v2326_v38  ;;  %v2087_v31 = vadd.f32 %v2037_v25, %v1931_v62  ;;  %v1799_v15 = vadd.f32 %v1752_v60, %v3660_v56 }
 0x296   : > { %2391 = vst.msk [vmem:[%s3740_s16 + $0x98] sm:$0xff] %vm2371_vm9, %v2358_v41 }
 0x297   : > { %v2227_v4 = vadd.f32 %v2177_v22, %v2087_v31  ;;  %v1883_v43 = vpop.f32.mrf.mxu2 }
 0x298   : > { %v1932_v35 = vadd.f32 %v1883_v43, %v1798_v9 }
 0x299   : > { %v2263_v23 = vadd.f32 %v3728_v42, %v2227_v4 }
 0x29b   : > { %vm2295_vm14 = vcmp.gt.f32.partialorder %v2263_v23, 0.0  ;;  %v2327_v13 = vmul.f32 0.01, %v2263_v23  ;;  %v2179_v37 = vpop.f32.mrf.mxu0 }
 0x29c   : > { %v2039_v44 = vpop.f32.mrf.mxu3  ;;  %v1754_v49 = vpop.f32.mrf.mxu1 }
 0x29d   : > { %v2359_v17 = vsel %vm2295_vm14, %v2263_v23, %v2327_v13  ;;  %v2088_v36 = vadd.f32 %v2039_v44, %v1932_v35  ;;  %v1800_v26 = vadd.f32 %v1754_v49, %v3665_v0 }
 0x29e   : > { %2392 = vst.msk [vmem:[%s3740_s16 + $0xa0] sm:$0xff] %vm2371_vm9, %v2359_v17 }
 0x29f   : > { %v2228_v16 = vadd.f32 %v2179_v37, %v2088_v36  ;;  %v1886_v6 = vpop.f32.mrf.mxu2 }
 0x2a0   : > { %v1933_v28 = vadd.f32 %v1886_v6, %v1799_v15 }
 0x2a1   : > { %v2264_v61 = vadd.f32 %v3728_v42, %v2228_v16 }
 0x2a3   : > { %vm2296_vm15 = vcmp.gt.f32.partialorder %v2264_v61, 0.0  ;;  %v2328_v46 = vmul.f32 0.01, %v2264_v61  ;;  %v2182_v55 = vpop.f32.mrf.mxu0 }
 0x2a4   : > { %v2042_v33 = vpop.f32.mrf.mxu3  ;;  %v1757_v11 = vpop.f32.mrf.mxu1 }
 0x2a5   : > { %v2360_v3 = vsel %vm2296_vm15, %v2264_v61, %v2328_v46  ;;  %v2089_v40 = vadd.f32 %v2042_v33, %v1933_v28  ;;  %v1801_v54 = vadd.f32 %v1757_v11, %v3674_v29 }
 0x2a6   : > { %2393 = vst.msk [vmem:[%s3740_s16 + $0xa8] sm:$0xff] %vm2371_vm9, %v2360_v3 }
 0x2a7   : > { %v2229_v19 = vadd.f32 %v2182_v55, %v2089_v40  ;;  %v1888_v50 = vpop.f32.mrf.mxu2 }
 0x2a8   : > { %v1934_v48 = vadd.f32 %v1888_v50, %v1800_v26 }
 0x2a9   : > { %v2265_v56 = vadd.f32 %v3728_v42, %v2229_v19 }
 0x2ab   : > { %vm2297_vm0 = vcmp.gt.f32.partialorder %v2265_v56, 0.0  ;;  %v2329_v30 = vmul.f32 0.01, %v2265_v56  ;;  %v2184_v39 = vpop.f32.mrf.mxu0 }
 0x2ac   : > { %v2044_v14 = vpop.f32.mrf.mxu3  ;;  %v1759_v18 = vpop.f32.mrf.mxu1 }
 0x2ad   : > { %v2361_v21 = vsel %vm2297_vm0, %v2265_v56, %v2329_v30  ;;  %v2090_v34 = vadd.f32 %v2044_v14, %v1934_v48  ;;  %v1802_v27 = vadd.f32 %v1759_v18, %v3679_v52 }
 0x2ae   : > { %2394 = vst.msk [vmem:[%s3740_s16 + $0xb0] sm:$0xff] %vm2371_vm9, %v2361_v21 }
 0x2af   : > { %v2230_v45 = vadd.f32 %v2184_v39, %v2090_v34  ;;  %v1891_v59 = vpop.f32.mrf.mxu2 }
 0x2b0   : > { %v1935_v10 = vadd.f32 %v1891_v59, %v1801_v54 }
 0x2b1   : > { %v2266_v0 = vadd.f32 %v3728_v42, %v2230_v45 }
 0x2b3   : > { %vm2298_vm1 = vcmp.gt.f32.partialorder %v2266_v0, 0.0  ;;  %v2330_v24 = vmul.f32 0.01, %v2266_v0  ;;  %v2187_v58 = vpop.f32.mrf.mxu0 }
 0x2b4   : > { %v2047_v1 = vpop.f32.mrf.mxu3  ;;  %v1762_v53 = vpop.f32.mrf.mxu1 }
 0x2b5   : > { %v2362_v12 = vsel %vm2298_vm1, %v2266_v0, %v2330_v24  ;;  %v2091_v57 = vadd.f32 %v2047_v1, %v1935_v10  ;;  %v1803_v4 = vadd.f32 %v1762_v53, %v3688_v20 }
 0x2b6   : > { %2395 = vst.msk [vmem:[%s3740_s16 + $0xb8] sm:$0xff] %vm2371_vm9, %v2362_v12 }
 0x2b7   : > { %v2231_v32 = vadd.f32 %v2187_v58, %v2091_v57  ;;  %v1893_v7 = vpop.f32.mrf.mxu2 }
 0x2b8   : > { %v1936_v47 = vadd.f32 %v1893_v7, %v1802_v27 }
 0x2b9   : > { %v2267_v29 = vadd.f32 %v3728_v42, %v2231_v32 }
 0x2bb   : > { %vm2299_vm2 = vcmp.gt.f32.partialorder %v2267_v29, 0.0  ;;  %v2331_v62 = vmul.f32 0.01, %v2267_v29  ;;  %v2189_v38 = vpop.f32.mrf.mxu0 }
 0x2bc   : > { %v2049_v22 = vpop.f32.mrf.mxu3  ;;  %v1764_v25 = vpop.f32.mrf.mxu1 }
 0x2bd   : > { %v2363_v60 = vsel %vm2299_vm2, %v2267_v29, %v2331_v62  ;;  %v2092_v41 = vadd.f32 %v2049_v22, %v1936_v47  ;;  %v1804_v36 = vadd.f32 %v1764_v25, %v3693_v8 }
 0x2be   : > { %2396 = vst.msk [vmem:[%s3740_s16 + $0xc0] sm:$0xff] %vm2371_vm9, %v2363_v60 }
 0x2bf   : > { %v2232_v31 = vadd.f32 %v2189_v38, %v2092_v41  ;;  %v1896_v9 = vpop.f32.mrf.mxu2 }
 0x2c0   : > { %v1937_v43 = vadd.f32 %v1896_v9, %v1803_v4 }
 0x2c1   : > { %v2268_v52 = vadd.f32 %v3728_v42, %v2232_v31 }
 0x2c3   : > { %vm2300_vm5 = vcmp.gt.f32.partialorder %v2268_v52, 0.0  ;;  %v2332_v23 = vmul.f32 0.01, %v2268_v52  ;;  %v2192_v35 = vpop.f32.mrf.mxu0 }
 0x2c4   : > { %v2052_v13 = vpop.f32.mrf.mxu3  ;;  %v1767_v49 = vpop.f32.mrf.mxu1 }
 0x2c5   : > { %v2364_v37 = vsel %vm2300_vm5, %v2268_v52, %v2332_v23  ;;  %v2093_v44 = vadd.f32 %v2052_v13, %v1937_v43  ;;  %v1805_v11 = vadd.f32 %v1767_v49, %v3702_v51 }
 0x2c6   : > { %2397 = vst.msk [vmem:[%s3740_s16 + $0xc8] sm:$0xff] %vm2371_vm9, %v2364_v37 }
 0x2c7   : > { %v2233_v17 = vadd.f32 %v2192_v35, %v2093_v44  ;;  %v1898_v16 = vpop.f32.mrf.mxu2 }
 0x2c8   : > { %v1938_v15 = vadd.f32 %v1898_v16, %v1804_v36 }
 0x2c9   : > { %v2269_v20 = vadd.f32 %v3728_v42, %v2233_v17 }
 0x2cb   : > { %vm2301_vm6 = vcmp.gt.f32.partialorder %v2269_v20, 0.0  ;;  %v2333_v6 = vmul.f32 0.01, %v2269_v20  ;;  %v2194_v61 = vpop.f32.mrf.mxu0 }
 0x2cc   : > { %v2054_v28 = vpop.f32.mrf.mxu3  ;;  %v1769_v40 = vpop.f32.mrf.mxu1 }
 0x2cd   : > { %v2365_v46 = vsel %vm2301_vm6, %v2269_v20, %v2333_v6  ;;  %v2094_v55 = vadd.f32 %v2054_v28, %v1938_v15  ;;  %v1806_v14 = vadd.f32 %v1769_v40, %v3707_v63 }
 0x2ce   : > { %2398 = vst.msk [vmem:[%s3740_s16 + $0xd0] sm:$0xff] %vm2371_vm9, %v2365_v46 }
 0x2cf   : > { %v2234_v33 = vadd.f32 %v2194_v61, %v2094_v55  ;;  %v1901_v3 = vpop.f32.mrf.mxu2 }
 0x2d0   : > { %v1939_v19 = vadd.f32 %v1901_v3, %v1805_v11 }
 0x2d1   : > { %v2270_v8 = vadd.f32 %v3728_v42, %v2234_v33 }
 0x2d3   : > { %vm2302_vm8 = vcmp.gt.f32.partialorder %v2270_v8, 0.0  ;;  %v2334_v26 = vmul.f32 0.01, %v2270_v8  ;;  %v2197_v50 = vpop.f32.mrf.mxu0 }
 0x2d4   : > { %v2057_v56 = vpop.f32.mrf.mxu3  ;;  %v1772_v34 = vpop.f32.mrf.mxu1 }
 0x2d5   : > { %v2366_v48 = vsel %vm2302_vm8, %v2270_v8, %v2334_v26  ;;  %v2095_v30 = vadd.f32 %v2057_v56, %v1939_v19  ;;  %v1807_v58 = vadd.f32 %v1772_v34, %v3716_v2 }
 0x2d6   : > { %2399 = vst.msk [vmem:[%s3740_s16 + $0xd8] sm:$0xff] %vm2371_vm9, %v2366_v48 }
 0x2d7   : > { %v2235_v39 = vadd.f32 %v2197_v50, %v2095_v30  ;;  %v1903_v18 = vpop.f32.mrf.mxu2 }
 0x2d8   : > { %v1940_v21 = vadd.f32 %v1903_v18, %v1806_v14 }
 0x2d9   : > { %v2271_v51 = vadd.f32 %v3728_v42, %v2235_v39 }
 0x2db   : > { %vm2303_vm3 = vcmp.gt.f32.partialorder %v2271_v51, 0.0  ;;  %v2335_v45 = vmul.f32 0.01, %v2271_v51  ;;  %v2199_v54 = vpop.f32.mrf.mxu0 }
 0x2dc   : > { %v2059_v59 = vpop.f32.mrf.mxu3  ;;  %v1774_v57 = vpop.f32.mrf.mxu1 }
 0x2dd   : > { %v2367_v0 = vsel %vm2303_vm3, %v2271_v51, %v2335_v45  ;;  %v2096_v10 = vadd.f32 %v2059_v59, %v1940_v21  ;;  %v1808_v62 = vadd.f32 %v1774_v57, %v3721_v5 }
 0x2de   : > { %2400 = vst.msk [vmem:[%s3740_s16 + $0xe0] sm:$0xff] %vm2371_vm9, %v2367_v0 }
 0x2df   : > { %v2236_v24 = vadd.f32 %v2199_v54, %v2096_v10  ;;  %v1906_v1 = vpop.f32.mrf.mxu2 }
 0x2e0   : > { %v1941_v53 = vadd.f32 %v1906_v1, %v1807_v58 }
 0x2e1   : > { %v2272_v63 = vadd.f32 %v3728_v42, %v2236_v24 }
 0x2e3   : > { %vm2304_vm7 = vcmp.gt.f32.partialorder %v2272_v63, 0.0  ;;  %v2336_v12 = vmul.f32 0.01, %v2272_v63  ;;  %v2202_v32 = vpop.f32.mrf.mxu0 }
 0x2e4   : > { %v2062_v27 = vpop.f32.mrf.mxu3 }
 0x2e5   : > { %v2368_v7 = vsel %vm2304_vm7, %v2272_v63, %v2336_v12  ;;  %v2097_v29 = vadd.f32 %v2062_v27, %v1941_v53 }
 0x2e6   : > { %2401 = vst.msk [vmem:[%s3740_s16 + $0xe8] sm:$0xff] %vm2371_vm9, %v2368_v7 }
 0x2e7   : > { %v2237_v47 = vadd.f32 %v2202_v32, %v2097_v29  ;;  %v1908_v38 = vpop.f32.mrf.mxu2 }
 0x2e8   : > { %v1942_v22 = vadd.f32 %v1908_v38, %v1808_v62 }
 0x2e9   : > { %v2273_v2 = vadd.f32 %v3728_v42, %v2237_v47 }
 0x2eb   : > { %vm2305_vm4 = vcmp.gt.f32.partialorder %v2273_v2, 0.0  ;;  %v2337_v25 = vmul.f32 0.01, %v2273_v2  ;;  %v2204_v4 = vpop.f32.mrf.mxu0 }
 0x2ec   : > { %v2064_v60 = vpop.f32.mrf.mxu3 }
 0x2ed   : > { %v2369_v41 = vsel %vm2305_vm4, %v2273_v2, %v2337_v25  ;;  %v2098_v31 = vadd.f32 %v2064_v60, %v1942_v22 }
 0x2ee   : > { %2402 = vst.msk [vmem:[%s3740_s16 + $0xf0] sm:$0xff] %vm2371_vm9, %v2369_v41 }
 0x2ef   : > { %v2238_v9 = vadd.f32 %v2204_v4, %v2098_v31 }
 0x2f1   : > { %v2274_v52 = vadd.f32 %v3728_v42, %v2238_v9 }
 0x2f3   : > { %vm2306_vm10 = vcmp.gt.f32.partialorder %v2274_v52, 0.0  ;;  %v2338_v43 = vmul.f32 0.01, %v2274_v52 }
 0x2f5   : > { %v2370_v23 = vsel %vm2306_vm10, %v2274_v52, %v2338_v43 }
 0x2f6   : > { %2403 = vst.msk [vmem:[%s3740_s16 + $0xf8] sm:$0xff] %vm2371_vm9, %v2370_v23 }
 0x2f7 PF: > { %s13_s12 = sadd.s32 1, %s2757_s12  }
 0x2f8   : > { %p10_p4 = scmp.ge.s32.totalorder %s13_s12, 4  }
 0x2fa   :  { %12 = sbr.rel (!%p10_p4) target bundleno = 1 (0x1), region = 70 }

</bundles_post_ra>
